<compile_context>
chip_gen: v7x
topology: tpu7x:2x2x1
jax: 0.10.0
libtpu: 0.0.40
codegen_flags: <defaults>
</compile_context>

<pallas_src>
import math
import functools

import jax
import jax.numpy as jnp
from jax import lax
from jax.experimental import pallas as pl
from jax.experimental.pallas import tpu as pltpu


# ---------------------------------------------------------------------------
# helpers
# ---------------------------------------------------------------------------
def _sublane_base(dtype):
    """Minimum sublane tile for the dtype's packing (f32:8, bf16:16, int8:32)."""
    return {4: 8, 2: 16, 1: 32}.get(jnp.dtype(dtype).itemsize, 8)


def _pick_tile(dim, preferred, base):
    """Largest tile <= preferred that is a multiple of `base` and divides `dim`.
    Falls back to the full dimension (always legal for BlockSpec).
    # TODO(synk): for large awkward dims add a pad/cdiv path instead of the
    # full-dim fallback (which could exceed the scoped VMEM limit)."""
    if dim <= preferred:
        return dim
    t = (preferred // base) * base
    while t >= base:
        if dim % t == 0:
            return t
        t -= base
    return dim


# ---------------------------------------------------------------------------
# Kernel 1: fused QKV projection.  x:(M,C) @ W:(C,3C) + b  ->  q:(M,C), kv:(M,2C)
# Single pallas_call: x is streamed from HBM once for all three projections.
# ---------------------------------------------------------------------------
def _qkv_linear_kernel(x_ref, w_ref, b_ref, oq_ref, okv_ref, acc_ref):
    k = pl.program_id(1)

    @pl.when(k == 0)
    def _init():
        acc_ref[...] = jnp.zeros(acc_ref.shape, acc_ref.dtype)

    # bf16 operands on the MXU, f32 accumulation.
    acc_ref[...] += jnp.dot(x_ref[...].astype(jnp.bfloat16),
                            w_ref[...].astype(jnp.bfloat16),
                            preferred_element_type=jnp.float32)

    @pl.when(k == pl.num_programs(1) - 1)
    def _finalize():
        C = oq_ref.shape[-1]
        out = acc_ref[...] + b_ref[...].astype(jnp.float32)     # (tm, 3C)
        oq_ref[...] = out[:, :C].astype(oq_ref.dtype)
        okv_ref[...] = out[:, C:].astype(okv_ref.dtype)


def qkv_linear(x2d, w, b, *, tm=512, tk=512):
    """x2d:(M,K), w:(K,3C), b:(3C,) -> (q:(M,C), kv:(M,2C))."""
    M, K = x2d.shape
    K2, N3 = w.shape
    assert K == K2 and N3 % 3 == 0
    C = N3 // 3
    itemsize = jnp.dtype(x2d.dtype).itemsize

    # Keep the (tk,3C) weight block (double-buffered) and the (tm,3C) f32
    # accumulator within a conservative VMEM budget (v7x: 64 MiB physical).
    while tk > 128 and 2 * tk * N3 * itemsize > (12 << 20):
        tk //= 2
    while tm > 8 and tm * N3 * 4 > (8 << 20):
        tm //= 2

    tm = _pick_tile(M, tm, _sublane_base(x2d.dtype))
    tk = _pick_tile(K, tk, 128)
    b2d = b.reshape(1, N3)

    cost = pl.CostEstimate(
        flops=2 * M * N3 * K,
        transcendentals=0,
        bytes_accessed=(M * K + K * N3 + M * N3) * itemsize)

    return pl.pallas_call(
        _qkv_linear_kernel,
        out_shape=(jax.ShapeDtypeStruct((M, C), x2d.dtype),
                   jax.ShapeDtypeStruct((M, 2 * C), x2d.dtype)),
        grid_spec=pltpu.PrefetchScalarGridSpec(
            num_scalar_prefetch=0,
            grid=(M // tm, K // tk),
            in_specs=[
                pl.BlockSpec((tm, tk), lambda i, k: (i, k)),
                pl.BlockSpec((tk, N3), lambda i, k: (k, 0)),
                pl.BlockSpec((1, N3), lambda i, k: (0, 0)),
            ],
            out_specs=(
                pl.BlockSpec((tm, C), lambda i, k: (i, 0)),
                pl.BlockSpec((tm, 2 * C), lambda i, k: (i, 0)),
            ),
            scratch_shapes=[pltpu.VMEM((tm, N3), jnp.float32)],
        ),
        compiler_params=pltpu.CompilerParams(
            dimension_semantics=("parallel", "arbitrary"),
        ),
        cost_estimate=cost,
    )(x2d, w, b2d)


# ---------------------------------------------------------------------------
# Kernel 2: general tiled linear  y = x @ W + b   (used for the output proj)
# ---------------------------------------------------------------------------
def _linear_kernel(x_ref, w_ref, b_ref, o_ref, acc_ref):
    k = pl.program_id(2)

    @pl.when(k == 0)
    def _init():
        acc_ref[...] = jnp.zeros(acc_ref.shape, acc_ref.dtype)

    acc_ref[...] += jnp.dot(x_ref[...].astype(jnp.bfloat16),
                            w_ref[...].astype(jnp.bfloat16),
                            preferred_element_type=jnp.float32)

    @pl.when(k == pl.num_programs(2) - 1)
    def _finalize():
        o_ref[...] = (acc_ref[...] + b_ref[...].astype(jnp.float32)).astype(o_ref.dtype)


def linear(x2d, w, b, *, tm=512, tn=512, tk=512):
    """x2d:(M,K), w:(K,N), b:(N,) -> (M,N). Tiled + pipelined."""
    M, K = x2d.shape
    K2, N = w.shape
    assert K == K2
    tm = _pick_tile(M, tm, _sublane_base(x2d.dtype))
    tn = _pick_tile(N, tn, 128)
    tk = _pick_tile(K, tk, 128)
    b2d = b.reshape(1, N)
    itemsize = jnp.dtype(x2d.dtype).itemsize

    cost = pl.CostEstimate(
        flops=2 * M * N * K,
        transcendentals=0,
        bytes_accessed=(M * K + K * N + M * N) * itemsize)

    return pl.pallas_call(
        _linear_kernel,
        out_shape=jax.ShapeDtypeStruct((M, N), x2d.dtype),
        grid_spec=pltpu.PrefetchScalarGridSpec(
            num_scalar_prefetch=0,
            grid=(M // tm, N // tn, K // tk),
            in_specs=[
                pl.BlockSpec((tm, tk), lambda i, j, k: (i, k)),
                pl.BlockSpec((tk, tn), lambda i, j, k: (k, j)),
                pl.BlockSpec((1, tn), lambda i, j, k: (0, j)),
            ],
            out_specs=pl.BlockSpec((tm, tn), lambda i, j, k: (i, j)),
            scratch_shapes=[pltpu.VMEM((tm, tn), jnp.float32)],
        ),
        compiler_params=pltpu.CompilerParams(
            dimension_semantics=("parallel", "parallel", "arbitrary"),
        ),
        cost_estimate=cost,
    )(x2d, w, b2d)


# ---------------------------------------------------------------------------
# Kernel 3: flash-style (non-causal) attention.
#   q : (B, T, C)      — all heads concatenated along channels
#   kv: (B, T, 2C)     — [k | v] concatenated along channels
#   out: (B, T, C)     — lane-dense, directly consumable by the output proj
# Heads are sliced from the refs inside the kernel (static column windows), so
# no (B,H,T,hd) transposes/reshapes of activations are ever materialized in HBM.
# ---------------------------------------------------------------------------
def _flash_attn_kernel(q_ref, kv_ref, o_ref, m_ref, l_ref, acc_ref, *,
                       n_head, scale):
    ki = pl.program_id(2)

    @pl.when(ki == 0)
    def _init():
        m_ref[...] = jnp.full(m_ref.shape, -jnp.inf, dtype=m_ref.dtype)
        l_ref[...] = jnp.zeros(l_ref.shape, l_ref.dtype)
        acc_ref[...] = jnp.zeros(acc_ref.shape, acc_ref.dtype)

    tq, C = q_ref.shape
    hd = C // n_head

    # Static unroll over heads (n_head is small).
    # TODO(synk): for very large n_head switch to lax.fori_loop + pl.ds to bound
    # vreg live ranges (static Python loops do not bound them).
    for h in range(n_head):
        sl = slice(h * hd, (h + 1) * hd)
        # Slice the refs (not loaded tiles): Mosaic fuses the column window into
        # the vector loads.  Fold the softmax scale into the (tq, hd) q slice
        # (much cheaper than scaling the (tq, tkv) score tile every kv step).
        qh = (q_ref[:, sl] * scale).astype(jnp.bfloat16)                  # (tq, hd)
        kh = kv_ref[:, sl].astype(jnp.bfloat16)                           # (tkv, hd)
        vh = kv_ref[:, C + h * hd: C + (h + 1) * hd].astype(jnp.bfloat16)  # (tkv, hd)

        # QK^T: contract last dims (no explicit transpose), bf16 MXU, f32 acc.
        s = lax.dot_general(qh, kh,
                            dimension_numbers=(((1,), (1,)), ((), ())),
                            preferred_element_type=jnp.float32)           # (tq, tkv)

        # One lane per head for the running statistics (no hd-wide replication).
        m_prev = m_ref[:, h:h + 1]                                        # (tq, 1)
        m_new = jnp.maximum(m_prev, jnp.max(s, axis=-1, keepdims=True))   # (tq, 1)
        alpha = jnp.exp(m_prev - m_new)                                   # (tq, 1)
        p = jnp.exp(s - m_new)                                            # (tq, tkv) f32

        l_ref[:, h:h + 1] = alpha * l_ref[:, h:h + 1] + jnp.sum(p, axis=-1, keepdims=True)
        acc_ref[:, sl] = alpha * acc_ref[:, sl] + jnp.dot(
            p.astype(jnp.bfloat16), vh, preferred_element_type=jnp.float32)
        m_ref[:, h:h + 1] = m_new

    @pl.when(ki == pl.num_programs(2) - 1)
    def _finalize():
        # Per-head 1/l broadcast happens only here (once per q tile), then one
        # full-width lane-dense store.  Reciprocal runs on the EUP slot.
        parts = []
        for h in range(n_head):
            inv_h = pl.reciprocal(l_ref[:, h:h + 1], approx=True)         # (tq, 1)
            parts.append(jnp.broadcast_to(inv_h, (tq, hd)))
        inv_full = jnp.concatenate(parts, axis=-1)                        # (tq, C)
        o_ref[...] = (acc_ref[...] * inv_full).astype(o_ref.dtype)


def flash_attention(q, kv, n_head, *, tq=256, tkv=256):
    """q:(B,T,C), kv:(B,T,2C) -> (B,T,C).  Non-causal (matches the reference)."""
    B, T, C = q.shape
    assert kv.shape == (B, T, 2 * C)
    hd = C // n_head
    assert hd * n_head == C and n_head <= 128
    scale = 1.0 / math.sqrt(hd)
    itemsize = jnp.dtype(q.dtype).itemsize

    # Conservative VMEM budget (double-buffered q/kv/out blocks + f32 scratch)
    # so the same config also fits v7x's 64 MiB VMEM (32 MiB default scoped).
    def _blocks_bytes(tq_, tkv_):
        return (2 * tq_ * C * itemsize            # q in (double-buffered)
                + 2 * tkv_ * 2 * C * itemsize     # kv in (double-buffered)
                + 2 * tq_ * C * itemsize          # out (double-buffered)
                + tq_ * C * 4 + 2 * tq_ * 128 * 4)  # acc + m/l scratch
    while tkv > 128 and _blocks_bytes(tq, tkv) > (24 << 20):
        tkv //= 2
    while tq > 128 and _blocks_bytes(tq, tkv) > (24 << 20):
        tq //= 2

    tq = _pick_tile(T, tq, _sublane_base(q.dtype))
    tkv = _pick_tile(T, tkv, 128)   # MXU N dim of QK^T: keep it a multiple of 128

    kern = functools.partial(_flash_attn_kernel, n_head=n_head, scale=scale)
    cost = pl.CostEstimate(
        flops=4 * B * T * T * C,                         # QK^T + PV
        transcendentals=B * n_head * T * T,              # exp
        bytes_accessed=(B * T * C + B * T * 2 * C + B * T * C) * itemsize)

    return pl.pallas_call(
        kern,
        out_shape=jax.ShapeDtypeStruct((B, T, C), q.dtype),
        grid_spec=pltpu.PrefetchScalarGridSpec(
            num_scalar_prefetch=0,
            grid=(B, T // tq, T // tkv),
            in_specs=[
                pl.BlockSpec((None, tq, C), lambda b, qi, ki: (b, qi, 0)),
                pl.BlockSpec((None, tkv, 2 * C), lambda b, qi, ki: (b, ki, 0)),
            ],
            out_specs=pl.BlockSpec((None, tq, C), lambda b, qi, ki: (b, qi, 0)),
            scratch_shapes=[
                pltpu.VMEM((tq, 128), jnp.float32),   # running max, 1 lane per head
                pltpu.VMEM((tq, 128), jnp.float32),   # running sum, 1 lane per head
                pltpu.VMEM((tq, C), jnp.float32),     # output accumulator
            ],
        ),
        compiler_params=pltpu.CompilerParams(
            dimension_semantics=("parallel", "parallel", "arbitrary"),
        ),
        cost_estimate=cost,
    )(q, kv)


# ---------------------------------------------------------------------------
# Module: CausalSelfAttentionv2 forward
# ---------------------------------------------------------------------------
def causal_self_attention_v2(x, params, *, n_head):
    """x: (B, T, C) -> (B, T, C)."""
    B, T, C = x.shape
    x2d = x.reshape(B * T, C)

    # Fused QKV projection (one kernel, x streamed once); k and v stay fused in
    # one (B, T, 2C) buffer for the KV stream of the attention kernel.
    q2d, kv2d = qkv_linear(x2d, params["w_attn"], params["b_attn"])

    y = flash_attention(q2d.reshape(B, T, C), kv2d.reshape(B, T, 2 * C), n_head)

    # Output projection.
    y = linear(y.reshape(B * T, C), params["w_proj"], params["b_proj"])
    return y.reshape(B, T, C)


def init_params(key, n_embd):
    """Deterministic params. Weights stored pre-transposed as (in, out)."""
    k1, k2, k3, k4 = jax.random.split(key, 4)
    s = 1.0 / math.sqrt(n_embd)
    return {
        "w_attn": jax.random.uniform(k1, (n_embd, 3 * n_embd), jnp.float32, -s, s),
        "b_attn": jax.random.uniform(k2, (3 * n_embd,), jnp.float32, -s, s),
        "w_proj": jax.random.uniform(k3, (n_embd, n_embd), jnp.float32, -s, s),
        "b_proj": jax.random.uniform(k4, (n_embd,), jnp.float32, -s, s),
    }


# Pure-JAX f32 reference (same math, no Pallas) for a sanity check.
def _reference(x, params, n_head):
    B, T, C = x.shape
    hd = C // n_head
    qkv = x @ params["w_attn"] + params["b_attn"]
    q, k, v = jnp.split(qkv, 3, axis=-1)
    q = q.reshape(B, T, n_head, hd).transpose(0, 2, 1, 3)
    k = k.reshape(B, T, n_head, hd).transpose(0, 2, 1, 3)
    v = v.reshape(B, T, n_head, hd).transpose(0, 2, 1, 3)
    s = jnp.einsum("bhqd,bhkd->bhqk", q, k) / math.sqrt(hd)
    p = jax.nn.softmax(s, axis=-1)
    y = jnp.einsum("bhqk,bhkd->bhqd", p, v)
    y = y.transpose(0, 2, 1, 3).reshape(B, T, C)
    return y @ params["w_proj"] + params["b_proj"]


if __name__ == "__main__":
    B, T, C, H = 2, 8, 32, 4  # batch, seq, n_embd, n_head

    key = jax.random.PRNGKey(0)
    kx, kp = jax.random.split(key)
    x = jax.random.normal(kx, (B, T, C), jnp.float32)
    params = init_params(kp, C)

    fwd = jax.jit(functools.partial(causal_self_attention_v2, n_head=H))
    y = jax.block_until_ready(fwd(x, params))

    y_ref = _reference(x, params, H)
    assert y.shape == (B, T, C)
    # bf16 MXU operands + approximate reciprocal -> compare at bf16-level tolerance.
    assert jnp.allclose(y, y_ref, atol=2e-2, rtol=2e-2), "mismatch vs reference"

    print("KERNEL_OK")
</pallas_src>

<mosaic_0001>
module attributes {stable_mosaic.version = 11 : i64} {
  func.func @_linear_kernel(%arg0: i32, %arg1: i32, %arg2: i32, %arg3: memref<16x32xf32, #tpu.memory_space<vmem>>, %arg4: memref<32x32xf32, #tpu.memory_space<vmem>>, %arg5: memref<1x32xf32, #tpu.memory_space<vmem>>, %arg6: memref<16x32xf32, #tpu.memory_space<vmem>>, %arg7: memref<16x32xf32, #tpu.memory_space<vmem>>) attributes {dimension_semantics = [#tpu.dimension_semantics<parallel>, #tpu.dimension_semantics<parallel>, #tpu.dimension_semantics<arbitrary>], iteration_bounds = array<i64: 1, 1, 1>, scalar_prefetch = 0 : i64, scratch_operands = 1 : i64, tpu.core_type = #tpu.core_type<tc>, window_params = [{transform_indices = @transform_0, window_bounds = array<i64: 16, 32>}, {transform_indices = @transform_1, window_bounds = array<i64: 32, 32>}, {transform_indices = @transform_2, window_bounds = array<i64: 1, 32>}, {transform_indices = @transform_3, window_bounds = array<i64: 16, 32>}]} {
    %c0_i32 = arith.constant 0 : i32
    %0 = arith.cmpi eq, %arg2, %c0_i32 : i32
    %1 = arith.extui %0 : i1 to i32
    %c0_i32_0 = arith.constant 0 : i32
    %2 = arith.cmpi ne, %1, %c0_i32_0 : i32
    scf.if %2 {
      %cst_10 = arith.constant 0.000000e+00 : f32
      %14 = vector.broadcast %cst_10 : f32 to vector<16x32xf32>
      %c0_11 = arith.constant 0 : index
      %c0_12 = arith.constant 0 : index
      %15 = vector.load %arg7[%c0_11, %c0_12] : memref<16x32xf32, #tpu.memory_space<vmem>>, vector<16x32xf32>
      tpu.vector_store %arg7[%c0_11, %c0_12], %14 {strides = array<i32>} : memref<16x32xf32, #tpu.memory_space<vmem>>, vector<16x32xf32>,
    } else {
    }
    %c0 = arith.constant 0 : index
    %c0_1 = arith.constant 0 : index
    %3 = vector.load %arg7[%c0, %c0_1] : memref<16x32xf32, #tpu.memory_space<vmem>>, vector<16x32xf32>
    %c0_2 = arith.constant 0 : index
    %c0_3 = arith.constant 0 : index
    %4 = vector.load %arg3[%c0_2, %c0_3] : memref<16x32xf32, #tpu.memory_space<vmem>>, vector<16x32xf32>
    %5 = arith.truncf %4 : vector<16x32xf32> to vector<16x32xbf16>
    %c0_4 = arith.constant 0 : index
    %c0_5 = arith.constant 0 : index
    %6 = vector.load %arg4[%c0_4, %c0_5] : memref<32x32xf32, #tpu.memory_space<vmem>>, vector<32x32xf32>
    %7 = arith.truncf %6 : vector<32x32xf32> to vector<32x32xbf16>
    %cst = arith.constant dense<0.000000e+00> : vector<16x32xf32>
    %8 = tpu.matmul %5, %7, %cst {dimension_numbers = #tpu.dot_dimension_numbers<[1], [0], [0], [1], [0, 0, 1, 1], [], []>} : vector<16x32xbf16>, vector<32x32xbf16>, vector<16x32xf32> -> vector<16x32xf32>
    %9 = arith.addf %3, %8 : vector<16x32xf32>
    %c0_6 = arith.constant 0 : index
    %c0_7 = arith.constant 0 : index
    %10 = vector.load %arg7[%c0_6, %c0_7] : memref<16x32xf32, #tpu.memory_space<vmem>>, vector<16x32xf32>
    tpu.vector_store %arg7[%c0_6, %c0_7], %9 {strides = array<i32>} : memref<16x32xf32, #tpu.memory_space<vmem>>, vector<16x32xf32>,
    %c0_i32_8 = arith.constant 0 : i32
    %11 = arith.cmpi eq, %arg2, %c0_i32_8 : i32
    %12 = arith.extui %11 : i1 to i32
    %c0_i32_9 = arith.constant 0 : i32
    %13 = arith.cmpi ne, %12, %c0_i32_9 : i32
    scf.if %13 {
      %c0_10 = arith.constant 0 : index
      %c0_11 = arith.constant 0 : index
      %14 = vector.load %arg7[%c0_10, %c0_11] : memref<16x32xf32, #tpu.memory_space<vmem>>, vector<16x32xf32>
      %c0_12 = arith.constant 0 : index
      %c0_13 = arith.constant 0 : index
      %15 = vector.load %arg5[%c0_12, %c0_13] : memref<1x32xf32, #tpu.memory_space<vmem>>, vector<1x32xf32>
      %16 = vector.broadcast %15 : vector<1x32xf32> to vector<16x32xf32>
      %17 = arith.addf %14, %16 : vector<16x32xf32>
      %c0_14 = arith.constant 0 : index
      %c0_15 = arith.constant 0 : index
      %18 = vector.load %arg6[%c0_14, %c0_15] : memref<16x32xf32, #tpu.memory_space<vmem>>, vector<16x32xf32>
      tpu.vector_store %arg6[%c0_14, %c0_15], %17 {strides = array<i32>} : memref<16x32xf32, #tpu.memory_space<vmem>>, vector<16x32xf32>,
    } else {
    }
    return
  }
  func.func @transform_0(%arg0: i32, %arg1: i32, %arg2: i32) -> (i32, i32) {
    %c0_i32 = arith.constant 0 : i32
    return %arg0, %arg2 : i32, i32
  }
  func.func @transform_1(%arg0: i32, %arg1: i32, %arg2: i32) -> (i32, i32) {
    %c0_i32 = arith.constant 0 : i32
    return %arg2, %arg1 : i32, i32
  }
  func.func @transform_2(%arg0: i32, %arg1: i32, %arg2: i32) -> (i32, i32) {
    %c0_i32 = arith.constant 0 : i32
    %c0_i32_0 = arith.constant 0 : i32
    return %c0_i32, %arg1 : i32, i32
  }
  func.func @transform_3(%arg0: i32, %arg1: i32, %arg2: i32) -> (i32, i32) {
    %c0_i32 = arith.constant 0 : i32
    return %arg0, %arg1 : i32, i32
  }
}

module attributes {stable_mosaic.version = 11 : i64} {
  func.func @_qkv_linear_kernel(%arg0: i32, %arg1: i32, %arg2: memref<16x32xf32, #tpu.memory_space<vmem>>, %arg3: memref<32x96xf32, #tpu.memory_space<vmem>>, %arg4: memref<1x96xf32, #tpu.memory_space<vmem>>, %arg5: memref<16x32xf32, #tpu.memory_space<vmem>>, %arg6: memref<16x64xf32, #tpu.memory_space<vmem>>, %arg7: memref<16x96xf32, #tpu.memory_space<vmem>>) attributes {dimension_semantics = [#tpu.dimension_semantics<parallel>, #tpu.dimension_semantics<arbitrary>], iteration_bounds = array<i64: 1, 1>, scalar_prefetch = 0 : i64, scratch_operands = 1 : i64, tpu.core_type = #tpu.core_type<tc>, window_params = [{transform_indices = @transform_0, window_bounds = array<i64: 16, 32>}, {transform_indices = @transform_1, window_bounds = array<i64: 32, 96>}, {pipeline_mode = #tpu.pipeline_mode<synchronous>, transform_indices = @transform_2, window_bounds = array<i64: 1, 96>}, {transform_indices = @transform_3, window_bounds = array<i64: 16, 32>}, {transform_indices = @transform_4, window_bounds = array<i64: 16, 64>}]} {
    %c0_i32 = arith.constant 0 : i32
    %0 = arith.cmpi eq, %arg1, %c0_i32 : i32
    %1 = arith.extui %0 : i1 to i32
    %c0_i32_0 = arith.constant 0 : i32
    %2 = arith.cmpi ne, %1, %c0_i32_0 : i32
    scf.if %2 {
      %cst_10 = arith.constant 0.000000e+00 : f32
      %14 = vector.broadcast %cst_10 : f32 to vector<16x96xf32>
      %c0_11 = arith.constant 0 : index
      %c0_12 = arith.constant 0 : index
      %15 = vector.load %arg7[%c0_11, %c0_12] : memref<16x96xf32, #tpu.memory_space<vmem>>, vector<16x96xf32>
      tpu.vector_store %arg7[%c0_11, %c0_12], %14 {strides = array<i32>} : memref<16x96xf32, #tpu.memory_space<vmem>>, vector<16x96xf32>,
    } else {
    }
    %c0 = arith.constant 0 : index
    %c0_1 = arith.constant 0 : index
    %3 = vector.load %arg7[%c0, %c0_1] : memref<16x96xf32, #tpu.memory_space<vmem>>, vector<16x96xf32>
    %c0_2 = arith.constant 0 : index
    %c0_3 = arith.constant 0 : index
    %4 = vector.load %arg2[%c0_2, %c0_3] : memref<16x32xf32, #tpu.memory_space<vmem>>, vector<16x32xf32>
    %5 = arith.truncf %4 : vector<16x32xf32> to vector<16x32xbf16>
    %c0_4 = arith.constant 0 : index
    %c0_5 = arith.constant 0 : index
    %6 = vector.load %arg3[%c0_4, %c0_5] : memref<32x96xf32, #tpu.memory_space<vmem>>, vector<32x96xf32>
    %7 = arith.truncf %6 : vector<32x96xf32> to vector<32x96xbf16>
    %cst = arith.constant dense<0.000000e+00> : vector<16x96xf32>
    %8 = tpu.matmul %5, %7, %cst {dimension_numbers = #tpu.dot_dimension_numbers<[1], [0], [0], [1], [0, 0, 1, 1], [], []>} : vector<16x32xbf16>, vector<32x96xbf16>, vector<16x96xf32> -> vector<16x96xf32>
    %9 = arith.addf %3, %8 : vector<16x96xf32>
    %c0_6 = arith.constant 0 : index
    %c0_7 = arith.constant 0 : index
    %10 = vector.load %arg7[%c0_6, %c0_7] : memref<16x96xf32, #tpu.memory_space<vmem>>, vector<16x96xf32>
    tpu.vector_store %arg7[%c0_6, %c0_7], %9 {strides = array<i32>} : memref<16x96xf32, #tpu.memory_space<vmem>>, vector<16x96xf32>,
    %c0_i32_8 = arith.constant 0 : i32
    %11 = arith.cmpi eq, %arg1, %c0_i32_8 : i32
    %12 = arith.extui %11 : i1 to i32
    %c0_i32_9 = arith.constant 0 : i32
    %13 = arith.cmpi ne, %12, %c0_i32_9 : i32
    scf.if %13 {
      %c0_10 = arith.constant 0 : index
      %c0_11 = arith.constant 0 : index
      %14 = vector.load %arg7[%c0_10, %c0_11] : memref<16x96xf32, #tpu.memory_space<vmem>>, vector<16x96xf32>
      %c0_12 = arith.constant 0 : index
      %c0_13 = arith.constant 0 : index
      %15 = vector.load %arg4[%c0_12, %c0_13] : memref<1x96xf32, #tpu.memory_space<vmem>>, vector<1x96xf32>
      %16 = vector.broadcast %15 : vector<1x96xf32> to vector<16x96xf32>
      %17 = arith.addf %14, %16 : vector<16x96xf32>
      %18 = vector.extract_strided_slice %17 {offsets = [0, 0], sizes = [16, 32], strides = [1, 1]} : vector<16x96xf32> to vector<16x32xf32>
      %c0_14 = arith.constant 0 : index
      %c0_15 = arith.constant 0 : index
      %19 = vector.load %arg5[%c0_14, %c0_15] : memref<16x32xf32, #tpu.memory_space<vmem>>, vector<16x32xf32>
      tpu.vector_store %arg5[%c0_14, %c0_15], %18 {strides = array<i32>} : memref<16x32xf32, #tpu.memory_space<vmem>>, vector<16x32xf32>,
      %20 = vector.extract_strided_slice %17 {offsets = [0, 32], sizes = [16, 64], strides = [1, 1]} : vector<16x96xf32> to vector<16x64xf32>
      %c0_16 = arith.constant 0 : index
      %c0_17 = arith.constant 0 : index
      %21 = vector.load %arg6[%c0_16, %c0_17] : memref<16x64xf32, #tpu.memory_space<vmem>>, vector<16x64xf32>
      tpu.vector_store %arg6[%c0_16, %c0_17], %20 {strides = array<i32>} : memref<16x64xf32, #tpu.memory_space<vmem>>, vector<16x64xf32>,
    } else {
    }
    return
  }
  func.func @transform_0(%arg0: i32, %arg1: i32) -> (i32, i32) {
    %c0_i32 = arith.constant 0 : i32
    return %arg0, %arg1 : i32, i32
  }
  func.func @transform_1(%arg0: i32, %arg1: i32) -> (i32, i32) {
    %c0_i32 = arith.constant 0 : i32
    %c0_i32_0 = arith.constant 0 : i32
    return %arg1, %c0_i32 : i32, i32
  }
  func.func @transform_2(%arg0: i32, %arg1: i32) -> (i32, i32) {
    %c0_i32 = arith.constant 0 : i32
    %c0_i32_0 = arith.constant 0 : i32
    %c0_i32_1 = arith.constant 0 : i32
    return %c0_i32, %c0_i32_0 : i32, i32
  }
  func.func @transform_3(%arg0: i32, %arg1: i32) -> (i32, i32) {
    %c0_i32 = arith.constant 0 : i32
    %c0_i32_0 = arith.constant 0 : i32
    return %arg0, %c0_i32 : i32, i32
  }
  func.func @transform_4(%arg0: i32, %arg1: i32) -> (i32, i32) {
    %c0_i32 = arith.constant 0 : i32
    %c0_i32_0 = arith.constant 0 : i32
    return %arg0, %c0_i32 : i32, i32
  }
}

module attributes {stable_mosaic.version = 11 : i64} {
  func.func @_flash_attn_kernel(%arg0: i32, %arg1: i32, %arg2: i32, %arg3: memref<1x8x32xf32, #tpu.memory_space<vmem>>, %arg4: memref<1x8x64xf32, #tpu.memory_space<vmem>>, %arg5: memref<1x8x32xf32, #tpu.memory_space<vmem>>, %arg6: memref<8x128xf32, #tpu.memory_space<vmem>>, %arg7: memref<8x128xf32, #tpu.memory_space<vmem>>, %arg8: memref<8x32xf32, #tpu.memory_space<vmem>>) attributes {dimension_semantics = [#tpu.dimension_semantics<parallel>, #tpu.dimension_semantics<parallel>, #tpu.dimension_semantics<arbitrary>], iteration_bounds = array<i64: 2, 1, 1>, scalar_prefetch = 0 : i64, scratch_operands = 3 : i64, tpu.core_type = #tpu.core_type<tc>, window_params = [{transform_indices = @transform_0, window_bounds = array<i64: 1, 8, 32>}, {transform_indices = @transform_1, window_bounds = array<i64: 1, 8, 64>}, {transform_indices = @transform_2, window_bounds = array<i64: 1, 8, 32>}]} {
    %c0_i32 = arith.constant 0 : i32
    %0 = arith.cmpi eq, %arg2, %c0_i32 : i32
    %1 = arith.extui %0 : i1 to i32
    %c0_i32_0 = arith.constant 0 : i32
    %2 = arith.cmpi ne, %1, %c0_i32_0 : i32
    scf.if %2 {
      %cst_95 = arith.constant 0xFF800000 : f32
      %146 = vector.broadcast %cst_95 : f32 to vector<8x128xf32>
      %c0_96 = arith.constant 0 : index
      %c0_97 = arith.constant 0 : index
      %147 = vector.load %arg6[%c0_96, %c0_97] : memref<8x128xf32, #tpu.memory_space<vmem>>, vector<8x128xf32>
      tpu.vector_store %arg6[%c0_96, %c0_97], %146 {strides = array<i32>} : memref<8x128xf32, #tpu.memory_space<vmem>>, vector<8x128xf32>,
      %cst_98 = arith.constant 0.000000e+00 : f32
      %148 = vector.broadcast %cst_98 : f32 to vector<8x128xf32>
      %c0_99 = arith.constant 0 : index
      %c0_100 = arith.constant 0 : index
      %149 = vector.load %arg7[%c0_99, %c0_100] : memref<8x128xf32, #tpu.memory_space<vmem>>, vector<8x128xf32>
      tpu.vector_store %arg7[%c0_99, %c0_100], %148 {strides = array<i32>} : memref<8x128xf32, #tpu.memory_space<vmem>>, vector<8x128xf32>,
      %cst_101 = arith.constant 0.000000e+00 : f32
      %150 = vector.broadcast %cst_101 : f32 to vector<8x32xf32>
      %c0_102 = arith.constant 0 : index
      %c0_103 = arith.constant 0 : index
      %151 = vector.load %arg8[%c0_102, %c0_103] : memref<8x32xf32, #tpu.memory_space<vmem>>, vector<8x32xf32>
      tpu.vector_store %arg8[%c0_102, %c0_103], %150 {strides = array<i32>} : memref<8x32xf32, #tpu.memory_space<vmem>>, vector<8x32xf32>,
    } else {
    }
    %c0 = arith.constant 0 : index
    %c0_1 = arith.constant 0 : index
    %c0_2 = arith.constant 0 : index
    %3 = vector.load %arg3[%c0, %c0_1, %c0_2] : memref<1x8x32xf32, #tpu.memory_space<vmem>>, vector<1x8x8xf32>
    %4 = vector.shape_cast %3 : vector<1x8x8xf32> to vector<8x8xf32>
    %cst = arith.constant 0.353553385 : f32
    %5 = vector.broadcast %cst : f32 to vector<8x8xf32>
    %6 = arith.mulf %4, %5 : vector<8x8xf32>
    %7 = arith.truncf %6 : vector<8x8xf32> to vector<8x8xbf16>
    %c0_3 = arith.constant 0 : index
    %c0_4 = arith.constant 0 : index
    %c0_5 = arith.constant 0 : index
    %8 = vector.load %arg4[%c0_3, %c0_4, %c0_5] : memref<1x8x64xf32, #tpu.memory_space<vmem>>, vector<1x8x8xf32>
    %9 = vector.shape_cast %8 : vector<1x8x8xf32> to vector<8x8xf32>
    %10 = arith.truncf %9 : vector<8x8xf32> to vector<8x8xbf16>
    %c0_6 = arith.constant 0 : index
    %c0_7 = arith.constant 0 : index
    %c32 = arith.constant 32 : index
    %11 = vector.load %arg4[%c0_6, %c0_7, %c32] : memref<1x8x64xf32, #tpu.memory_space<vmem>>, vector<1x8x8xf32>
    %12 = vector.shape_cast %11 : vector<1x8x8xf32> to vector<8x8xf32>
    %13 = arith.truncf %12 : vector<8x8xf32> to vector<8x8xbf16>
    %cst_8 = arith.constant dense<0.000000e+00> : vector<8x8xf32>
    %14 = tpu.matmul %7, %10, %cst_8 {dimension_numbers = #tpu.dot_dimension_numbers<[1], [1], [0], [0], [0, 0, 1, 0], [], []>} : vector<8x8xbf16>, vector<8x8xbf16>, vector<8x8xf32> -> vector<8x8xf32>
    %c0_9 = arith.constant 0 : index
    %c0_10 = arith.constant 0 : index
    %15 = vector.load %arg6[%c0_9, %c0_10] : memref<8x128xf32, #tpu.memory_space<vmem>>, vector<8x1xf32>
    %cst_11 = arith.constant dense<0xFF800000> : vector<8xf32>
    %16 = vector.multi_reduction <maximumf>, %14, %cst_11 [1] : vector<8x8xf32> to vector<8xf32>
    %17 = vector.shape_cast %16 : vector<8xf32> to vector<8x1xf32>
    %18 = arith.maximumf %15, %17 : vector<8x1xf32>
    %19 = arith.subf %15, %18 : vector<8x1xf32>
    %20 = math.exp %19 : vector<8x1xf32>
    %21 = vector.broadcast %18 : vector<8x1xf32> to vector<8x8xf32>
    %22 = arith.subf %14, %21 : vector<8x8xf32>
    %23 = math.exp %22 : vector<8x8xf32>
    %c0_12 = arith.constant 0 : index
    %c0_13 = arith.constant 0 : index
    %24 = vector.load %arg7[%c0_12, %c0_13] : memref<8x128xf32, #tpu.memory_space<vmem>>, vector<8x1xf32>
    %25 = arith.mulf %20, %24 : vector<8x1xf32>
    %cst_14 = arith.constant dense<0.000000e+00> : vector<8xf32>
    %26 = vector.multi_reduction <add>, %23, %cst_14 [1] : vector<8x8xf32> to vector<8xf32>
    %27 = vector.shape_cast %26 : vector<8xf32> to vector<8x1xf32>
    %28 = arith.addf %25, %27 : vector<8x1xf32>
    %c0_15 = arith.constant 0 : index
    %c0_16 = arith.constant 0 : index
    %29 = vector.load %arg7[%c0_15, %c0_16] : memref<8x128xf32, #tpu.memory_space<vmem>>, vector<8x1xf32>
    tpu.vector_store %arg7[%c0_15, %c0_16], %28 {strides = array<i32>} : memref<8x128xf32, #tpu.memory_space<vmem>>, vector<8x1xf32>,
    %c0_17 = arith.constant 0 : index
    %c0_18 = arith.constant 0 : index
    %30 = vector.load %arg8[%c0_17, %c0_18] : memref<8x32xf32, #tpu.memory_space<vmem>>, vector<8x8xf32>
    %31 = vector.broadcast %20 : vector<8x1xf32> to vector<8x8xf32>
    %32 = arith.mulf %31, %30 : vector<8x8xf32>
    %33 = arith.truncf %23 : vector<8x8xf32> to vector<8x8xbf16>
    %cst_19 = arith.constant dense<0.000000e+00> : vector<8x8xf32>
    %34 = tpu.matmul %33, %13, %cst_19 {dimension_numbers = #tpu.dot_dimension_numbers<[1], [0], [0], [1], [0, 0, 1, 1], [], []>} : vector<8x8xbf16>, vector<8x8xbf16>, vector<8x8xf32> -> vector<8x8xf32>
    %35 = arith.addf %32, %34 : vector<8x8xf32>
    %c0_20 = arith.constant 0 : index
    %c0_21 = arith.constant 0 : index
    %36 = vector.load %arg8[%c0_20, %c0_21] : memref<8x32xf32, #tpu.memory_space<vmem>>, vector<8x8xf32>
    tpu.vector_store %arg8[%c0_20, %c0_21], %35 {strides = array<i32>} : memref<8x32xf32, #tpu.memory_space<vmem>>, vector<8x8xf32>,
    %c0_22 = arith.constant 0 : index
    %c0_23 = arith.constant 0 : index
    %37 = vector.load %arg6[%c0_22, %c0_23] : memref<8x128xf32, #tpu.memory_space<vmem>>, vector<8x1xf32>
    tpu.vector_store %arg6[%c0_22, %c0_23], %18 {strides = array<i32>} : memref<8x128xf32, #tpu.memory_space<vmem>>, vector<8x1xf32>,
    %c0_24 = arith.constant 0 : index
    %c0_25 = arith.constant 0 : index
    %c8 = arith.constant 8 : index
    %38 = vector.load %arg3[%c0_24, %c0_25, %c8] : memref<1x8x32xf32, #tpu.memory_space<vmem>>, vector<1x8x8xf32>
    %39 = vector.shape_cast %38 : vector<1x8x8xf32> to vector<8x8xf32>
    %cst_26 = arith.constant 0.353553385 : f32
    %40 = vector.broadcast %cst_26 : f32 to vector<8x8xf32>
    %41 = arith.mulf %39, %40 : vector<8x8xf32>
    %42 = arith.truncf %41 : vector<8x8xf32> to vector<8x8xbf16>
    %c0_27 = arith.constant 0 : index
    %c0_28 = arith.constant 0 : index
    %c8_29 = arith.constant 8 : index
    %43 = vector.load %arg4[%c0_27, %c0_28, %c8_29] : memref<1x8x64xf32, #tpu.memory_space<vmem>>, vector<1x8x8xf32>
    %44 = vector.shape_cast %43 : vector<1x8x8xf32> to vector<8x8xf32>
    %45 = arith.truncf %44 : vector<8x8xf32> to vector<8x8xbf16>
    %c0_30 = arith.constant 0 : index
    %c0_31 = arith.constant 0 : index
    %c40 = arith.constant 40 : index
    %46 = vector.load %arg4[%c0_30, %c0_31, %c40] : memref<1x8x64xf32, #tpu.memory_space<vmem>>, vector<1x8x8xf32>
    %47 = vector.shape_cast %46 : vector<1x8x8xf32> to vector<8x8xf32>
    %48 = arith.truncf %47 : vector<8x8xf32> to vector<8x8xbf16>
    %cst_32 = arith.constant dense<0.000000e+00> : vector<8x8xf32>
    %49 = tpu.matmul %42, %45, %cst_32 {dimension_numbers = #tpu.dot_dimension_numbers<[1], [1], [0], [0], [0, 0, 1, 0], [], []>} : vector<8x8xbf16>, vector<8x8xbf16>, vector<8x8xf32> -> vector<8x8xf32>
    %c0_33 = arith.constant 0 : index
    %c1 = arith.constant 1 : index
    %50 = vector.load %arg6[%c0_33, %c1] : memref<8x128xf32, #tpu.memory_space<vmem>>, vector<8x1xf32>
    %cst_34 = arith.constant dense<0xFF800000> : vector<8xf32>
    %51 = vector.multi_reduction <maximumf>, %49, %cst_34 [1] : vector<8x8xf32> to vector<8xf32>
    %52 = vector.shape_cast %51 : vector<8xf32> to vector<8x1xf32>
    %53 = arith.maximumf %50, %52 : vector<8x1xf32>
    %54 = arith.subf %50, %53 : vector<8x1xf32>
    %55 = math.exp %54 : vector<8x1xf32>
    %56 = vector.broadcast %53 : vector<8x1xf32> to vector<8x8xf32>
    %57 = arith.subf %49, %56 : vector<8x8xf32>
    %58 = math.exp %57 : vector<8x8xf32>
    %c0_35 = arith.constant 0 : index
    %c1_36 = arith.constant 1 : index
    %59 = vector.load %arg7[%c0_35, %c1_36] : memref<8x128xf32, #tpu.memory_space<vmem>>, vector<8x1xf32>
    %60 = arith.mulf %55, %59 : vector<8x1xf32>
    %cst_37 = arith.constant dense<0.000000e+00> : vector<8xf32>
    %61 = vector.multi_reduction <add>, %58, %cst_37 [1] : vector<8x8xf32> to vector<8xf32>
    %62 = vector.shape_cast %61 : vector<8xf32> to vector<8x1xf32>
    %63 = arith.addf %60, %62 : vector<8x1xf32>
    %c0_38 = arith.constant 0 : index
    %c1_39 = arith.constant 1 : index
    %64 = vector.load %arg7[%c0_38, %c1_39] : memref<8x128xf32, #tpu.memory_space<vmem>>, vector<8x1xf32>
    tpu.vector_store %arg7[%c0_38, %c1_39], %63 {strides = array<i32>} : memref<8x128xf32, #tpu.memory_space<vmem>>, vector<8x1xf32>,
    %c0_40 = arith.constant 0 : index
    %c8_41 = arith.constant 8 : index
    %65 = vector.load %arg8[%c0_40, %c8_41] : memref<8x32xf32, #tpu.memory_space<vmem>>, vector<8x8xf32>
    %66 = vector.broadcast %55 : vector<8x1xf32> to vector<8x8xf32>
    %67 = arith.mulf %66, %65 : vector<8x8xf32>
    %68 = arith.truncf %58 : vector<8x8xf32> to vector<8x8xbf16>
    %cst_42 = arith.constant dense<0.000000e+00> : vector<8x8xf32>
    %69 = tpu.matmul %68, %48, %cst_42 {dimension_numbers = #tpu.dot_dimension_numbers<[1], [0], [0], [1], [0, 0, 1, 1], [], []>} : vector<8x8xbf16>, vector<8x8xbf16>, vector<8x8xf32> -> vector<8x8xf32>
    %70 = arith.addf %67, %69 : vector<8x8xf32>
    %c0_43 = arith.constant 0 : index
    %c8_44 = arith.constant 8 : index
    %71 = vector.load %arg8[%c0_43, %c8_44] : memref<8x32xf32, #tpu.memory_space<vmem>>, vector<8x8xf32>
    tpu.vector_store %arg8[%c0_43, %c8_44], %70 {strides = array<i32>} : memref<8x32xf32, #tpu.memory_space<vmem>>, vector<8x8xf32>,
    %c0_45 = arith.constant 0 : index
    %c1_46 = arith.constant 1 : index
    %72 = vector.load %arg6[%c0_45, %c1_46] : memref<8x128xf32, #tpu.memory_space<vmem>>, vector<8x1xf32>
    tpu.vector_store %arg6[%c0_45, %c1_46], %53 {strides = array<i32>} : memref<8x128xf32, #tpu.memory_space<vmem>>, vector<8x1xf32>,
    %c0_47 = arith.constant 0 : index
    %c0_48 = arith.constant 0 : index
    %c16 = arith.constant 16 : index
    %73 = vector.load %arg3[%c0_47, %c0_48, %c16] : memref<1x8x32xf32, #tpu.memory_space<vmem>>, vector<1x8x8xf32>
    %74 = vector.shape_cast %73 : vector<1x8x8xf32> to vector<8x8xf32>
    %cst_49 = arith.constant 0.353553385 : f32
    %75 = vector.broadcast %cst_49 : f32 to vector<8x8xf32>
    %76 = arith.mulf %74, %75 : vector<8x8xf32>
    %77 = arith.truncf %76 : vector<8x8xf32> to vector<8x8xbf16>
    %c0_50 = arith.constant 0 : index
    %c0_51 = arith.constant 0 : index
    %c16_52 = arith.constant 16 : index
    %78 = vector.load %arg4[%c0_50, %c0_51, %c16_52] : memref<1x8x64xf32, #tpu.memory_space<vmem>>, vector<1x8x8xf32>
    %79 = vector.shape_cast %78 : vector<1x8x8xf32> to vector<8x8xf32>
    %80 = arith.truncf %79 : vector<8x8xf32> to vector<8x8xbf16>
    %c0_53 = arith.constant 0 : index
    %c0_54 = arith.constant 0 : index
    %c48 = arith.constant 48 : index
    %81 = vector.load %arg4[%c0_53, %c0_54, %c48] : memref<1x8x64xf32, #tpu.memory_space<vmem>>, vector<1x8x8xf32>
    %82 = vector.shape_cast %81 : vector<1x8x8xf32> to vector<8x8xf32>
    %83 = arith.truncf %82 : vector<8x8xf32> to vector<8x8xbf16>
    %cst_55 = arith.constant dense<0.000000e+00> : vector<8x8xf32>
    %84 = tpu.matmul %77, %80, %cst_55 {dimension_numbers = #tpu.dot_dimension_numbers<[1], [1], [0], [0], [0, 0, 1, 0], [], []>} : vector<8x8xbf16>, vector<8x8xbf16>, vector<8x8xf32> -> vector<8x8xf32>
    %c0_56 = arith.constant 0 : index
    %c2 = arith.constant 2 : index
    %85 = vector.load %arg6[%c0_56, %c2] : memref<8x128xf32, #tpu.memory_space<vmem>>, vector<8x1xf32>
    %cst_57 = arith.constant dense<0xFF800000> : vector<8xf32>
    %86 = vector.multi_reduction <maximumf>, %84, %cst_57 [1] : vector<8x8xf32> to vector<8xf32>
    %87 = vector.shape_cast %86 : vector<8xf32> to vector<8x1xf32>
    %88 = arith.maximumf %85, %87 : vector<8x1xf32>
    %89 = arith.subf %85, %88 : vector<8x1xf32>
    %90 = math.exp %89 : vector<8x1xf32>
    %91 = vector.broadcast %88 : vector<8x1xf32> to vector<8x8xf32>
    %92 = arith.subf %84, %91 : vector<8x8xf32>
    %93 = math.exp %92 : vector<8x8xf32>
    %c0_58 = arith.constant 0 : index
    %c2_59 = arith.constant 2 : index
    %94 = vector.load %arg7[%c0_58, %c2_59] : memref<8x128xf32, #tpu.memory_space<vmem>>, vector<8x1xf32>
    %95 = arith.mulf %90, %94 : vector<8x1xf32>
    %cst_60 = arith.constant dense<0.000000e+00> : vector<8xf32>
    %96 = vector.multi_reduction <add>, %93, %cst_60 [1] : vector<8x8xf32> to vector<8xf32>
    %97 = vector.shape_cast %96 : vector<8xf32> to vector<8x1xf32>
    %98 = arith.addf %95, %97 : vector<8x1xf32>
    %c0_61 = arith.constant 0 : index
    %c2_62 = arith.constant 2 : index
    %99 = vector.load %arg7[%c0_61, %c2_62] : memref<8x128xf32, #tpu.memory_space<vmem>>, vector<8x1xf32>
    tpu.vector_store %arg7[%c0_61, %c2_62], %98 {strides = array<i32>} : memref<8x128xf32, #tpu.memory_space<vmem>>, vector<8x1xf32>,
    %c0_63 = arith.constant 0 : index
    %c16_64 = arith.constant 16 : index
    %100 = vector.load %arg8[%c0_63, %c16_64] : memref<8x32xf32, #tpu.memory_space<vmem>>, vector<8x8xf32>
    %101 = vector.broadcast %90 : vector<8x1xf32> to vector<8x8xf32>
    %102 = arith.mulf %101, %100 : vector<8x8xf32>
    %103 = arith.truncf %93 : vector<8x8xf32> to vector<8x8xbf16>
    %cst_65 = arith.constant dense<0.000000e+00> : vector<8x8xf32>
    %104 = tpu.matmul %103, %83, %cst_65 {dimension_numbers = #tpu.dot_dimension_numbers<[1], [0], [0], [1], [0, 0, 1, 1], [], []>} : vector<8x8xbf16>, vector<8x8xbf16>, vector<8x8xf32> -> vector<8x8xf32>
    %105 = arith.addf %102, %104 : vector<8x8xf32>
    %c0_66 = arith.constant 0 : index
    %c16_67 = arith.constant 16 : index
    %106 = vector.load %arg8[%c0_66, %c16_67] : memref<8x32xf32, #tpu.memory_space<vmem>>, vector<8x8xf32>
    tpu.vector_store %arg8[%c0_66, %c16_67], %105 {strides = array<i32>} : memref<8x32xf32, #tpu.memory_space<vmem>>, vector<8x8xf32>,
    %c0_68 = arith.constant 0 : index
    %c2_69 = arith.constant 2 : index
    %107 = vector.load %arg6[%c0_68, %c2_69] : memref<8x128xf32, #tpu.memory_space<vmem>>, vector<8x1xf32>
    tpu.vector_store %arg6[%c0_68, %c2_69], %88 {strides = array<i32>} : memref<8x128xf32, #tpu.memory_space<vmem>>, vector<8x1xf32>,
    %c0_70 = arith.constant 0 : index
    %c0_71 = arith.constant 0 : index
    %c24 = arith.constant 24 : index
    %108 = vector.load %arg3[%c0_70, %c0_71, %c24] : memref<1x8x32xf32, #tpu.memory_space<vmem>>, vector<1x8x8xf32>
    %109 = vector.shape_cast %108 : vector<1x8x8xf32> to vector<8x8xf32>
    %cst_72 = arith.constant 0.353553385 : f32
    %110 = vector.broadcast %cst_72 : f32 to vector<8x8xf32>
    %111 = arith.mulf %109, %110 : vector<8x8xf32>
    %112 = arith.truncf %111 : vector<8x8xf32> to vector<8x8xbf16>
    %c0_73 = arith.constant 0 : index
    %c0_74 = arith.constant 0 : index
    %c24_75 = arith.constant 24 : index
    %113 = vector.load %arg4[%c0_73, %c0_74, %c24_75] : memref<1x8x64xf32, #tpu.memory_space<vmem>>, vector<1x8x8xf32>
    %114 = vector.shape_cast %113 : vector<1x8x8xf32> to vector<8x8xf32>
    %115 = arith.truncf %114 : vector<8x8xf32> to vector<8x8xbf16>
    %c0_76 = arith.constant 0 : index
    %c0_77 = arith.constant 0 : index
    %c56 = arith.constant 56 : index
    %116 = vector.load %arg4[%c0_76, %c0_77, %c56] : memref<1x8x64xf32, #tpu.memory_space<vmem>>, vector<1x8x8xf32>
    %117 = vector.shape_cast %116 : vector<1x8x8xf32> to vector<8x8xf32>
    %118 = arith.truncf %117 : vector<8x8xf32> to vector<8x8xbf16>
    %cst_78 = arith.constant dense<0.000000e+00> : vector<8x8xf32>
    %119 = tpu.matmul %112, %115, %cst_78 {dimension_numbers = #tpu.dot_dimension_numbers<[1], [1], [0], [0], [0, 0, 1, 0], [], []>} : vector<8x8xbf16>, vector<8x8xbf16>, vector<8x8xf32> -> vector<8x8xf32>
    %c0_79 = arith.constant 0 : index
    %c3 = arith.constant 3 : index
    %120 = vector.load %arg6[%c0_79, %c3] : memref<8x128xf32, #tpu.memory_space<vmem>>, vector<8x1xf32>
    %cst_80 = arith.constant dense<0xFF800000> : vector<8xf32>
    %121 = vector.multi_reduction <maximumf>, %119, %cst_80 [1] : vector<8x8xf32> to vector<8xf32>
    %122 = vector.shape_cast %121 : vector<8xf32> to vector<8x1xf32>
    %123 = arith.maximumf %120, %122 : vector<8x1xf32>
    %124 = arith.subf %120, %123 : vector<8x1xf32>
    %125 = math.exp %124 : vector<8x1xf32>
    %126 = vector.broadcast %123 : vector<8x1xf32> to vector<8x8xf32>
    %127 = arith.subf %119, %126 : vector<8x8xf32>
    %128 = math.exp %127 : vector<8x8xf32>
    %c0_81 = arith.constant 0 : index
    %c3_82 = arith.constant 3 : index
    %129 = vector.load %arg7[%c0_81, %c3_82] : memref<8x128xf32, #tpu.memory_space<vmem>>, vector<8x1xf32>
    %130 = arith.mulf %125, %129 : vector<8x1xf32>
    %cst_83 = arith.constant dense<0.000000e+00> : vector<8xf32>
    %131 = vector.multi_reduction <add>, %128, %cst_83 [1] : vector<8x8xf32> to vector<8xf32>
    %132 = vector.shape_cast %131 : vector<8xf32> to vector<8x1xf32>
    %133 = arith.addf %130, %132 : vector<8x1xf32>
    %c0_84 = arith.constant 0 : index
    %c3_85 = arith.constant 3 : index
    %134 = vector.load %arg7[%c0_84, %c3_85] : memref<8x128xf32, #tpu.memory_space<vmem>>, vector<8x1xf32>
    tpu.vector_store %arg7[%c0_84, %c3_85], %133 {strides = array<i32>} : memref<8x128xf32, #tpu.memory_space<vmem>>, vector<8x1xf32>,
    %c0_86 = arith.constant 0 : index
    %c24_87 = arith.constant 24 : index
    %135 = vector.load %arg8[%c0_86, %c24_87] : memref<8x32xf32, #tpu.memory_space<vmem>>, vector<8x8xf32>
    %136 = vector.broadcast %125 : vector<8x1xf32> to vector<8x8xf32>
    %137 = arith.mulf %136, %135 : vector<8x8xf32>
    %138 = arith.truncf %128 : vector<8x8xf32> to vector<8x8xbf16>
    %cst_88 = arith.constant dense<0.000000e+00> : vector<8x8xf32>
    %139 = tpu.matmul %138, %118, %cst_88 {dimension_numbers = #tpu.dot_dimension_numbers<[1], [0], [0], [1], [0, 0, 1, 1], [], []>} : vector<8x8xbf16>, vector<8x8xbf16>, vector<8x8xf32> -> vector<8x8xf32>
    %140 = arith.addf %137, %139 : vector<8x8xf32>
    %c0_89 = arith.constant 0 : index
    %c24_90 = arith.constant 24 : index
    %141 = vector.load %arg8[%c0_89, %c24_90] : memref<8x32xf32, #tpu.memory_space<vmem>>, vector<8x8xf32>
    tpu.vector_store %arg8[%c0_89, %c24_90], %140 {strides = array<i32>} : memref<8x32xf32, #tpu.memory_space<vmem>>, vector<8x8xf32>,
    %c0_91 = arith.constant 0 : index
    %c3_92 = arith.constant 3 : index
    %142 = vector.load %arg6[%c0_91, %c3_92] : memref<8x128xf32, #tpu.memory_space<vmem>>, vector<8x1xf32>
    tpu.vector_store %arg6[%c0_91, %c3_92], %123 {strides = array<i32>} : memref<8x128xf32, #tpu.memory_space<vmem>>, vector<8x1xf32>,
    %c0_i32_93 = arith.constant 0 : i32
    %143 = arith.cmpi eq, %arg2, %c0_i32_93 : i32
    %144 = arith.extui %143 : i1 to i32
    %c0_i32_94 = arith.constant 0 : i32
    %145 = arith.cmpi ne, %144, %c0_i32_94 : i32
    scf.if %145 {
      %c0_95 = arith.constant 0 : index
      %c0_96 = arith.constant 0 : index
      %146 = vector.load %arg7[%c0_95, %c0_96] : memref<8x128xf32, #tpu.memory_space<vmem>>, vector<8x1xf32>
      %147 = tpu.reciprocal %146 {approx = true} : vector<8x1xf32> -> vector<8x1xf32>
      %148 = vector.shape_cast %147 : vector<8x1xf32> to vector<8x1xf32>
      %149 = vector.broadcast %148 : vector<8x1xf32> to vector<8x8xf32>
      %c0_97 = arith.constant 0 : index
      %c1_98 = arith.constant 1 : index
      %150 = vector.load %arg7[%c0_97, %c1_98] : memref<8x128xf32, #tpu.memory_space<vmem>>, vector<8x1xf32>
      %151 = tpu.reciprocal %150 {approx = true} : vector<8x1xf32> -> vector<8x1xf32>
      %152 = vector.shape_cast %151 : vector<8x1xf32> to vector<8x1xf32>
      %153 = vector.broadcast %152 : vector<8x1xf32> to vector<8x8xf32>
      %c0_99 = arith.constant 0 : index
      %c2_100 = arith.constant 2 : index
      %154 = vector.load %arg7[%c0_99, %c2_100] : memref<8x128xf32, #tpu.memory_space<vmem>>, vector<8x1xf32>
      %155 = tpu.reciprocal %154 {approx = true} : vector<8x1xf32> -> vector<8x1xf32>
      %156 = vector.shape_cast %155 : vector<8x1xf32> to vector<8x1xf32>
      %157 = vector.broadcast %156 : vector<8x1xf32> to vector<8x8xf32>
      %c0_101 = arith.constant 0 : index
      %c3_102 = arith.constant 3 : index
      %158 = vector.load %arg7[%c0_101, %c3_102] : memref<8x128xf32, #tpu.memory_space<vmem>>, vector<8x1xf32>
      %159 = tpu.reciprocal %158 {approx = true} : vector<8x1xf32> -> vector<8x1xf32>
      %160 = vector.shape_cast %159 : vector<8x1xf32> to vector<8x1xf32>
      %161 = vector.broadcast %160 : vector<8x1xf32> to vector<8x8xf32>
      %162 = tpu.concatenate %149, %153, %157, %161 in 1 : vector<8x8xf32>, vector<8x8xf32>, vector<8x8xf32>, vector<8x8xf32> -> vector<8x32xf32>
      %c0_103 = arith.constant 0 : index
      %c0_104 = arith.constant 0 : index
      %163 = vector.load %arg8[%c0_103, %c0_104] : memref<8x32xf32, #tpu.memory_space<vmem>>, vector<8x32xf32>
      %164 = arith.mulf %163, %162 : vector<8x32xf32>
      %c0_105 = arith.constant 0 : index
      %c0_106 = arith.constant 0 : index
      %c0_107 = arith.constant 0 : index
      %165 = vector.load %arg5[%c0_105, %c0_106, %c0_107] : memref<1x8x32xf32, #tpu.memory_space<vmem>>, vector<1x8x32xf32>
      %166 = vector.shape_cast %165 : vector<1x8x32xf32> to vector<8x32xf32>
      %167 = vector.shape_cast %164 : vector<8x32xf32> to vector<1x8x32xf32>
      tpu.vector_store %arg5[%c0_105, %c0_106, %c0_107], %167 {strides = array<i32>} : memref<1x8x32xf32, #tpu.memory_space<vmem>>, vector<1x8x32xf32>,
    } else {
    }
    return
  }
  func.func @transform_0(%arg0: i32, %arg1: i32, %arg2: i32) -> (i32, i32, i32) {
    %c0_i32 = arith.constant 0 : i32
    %c0_i32_0 = arith.constant 0 : i32
    return %arg0, %arg1, %c0_i32 : i32, i32, i32
  }
  func.func @transform_1(%arg0: i32, %arg1: i32, %arg2: i32) -> (i32, i32, i32) {
    %c0_i32 = arith.constant 0 : i32
    %c0_i32_0 = arith.constant 0 : i32
    return %arg0, %arg2, %c0_i32 : i32, i32, i32
  }
  func.func @transform_2(%arg0: i32, %arg1: i32, %arg2: i32) -> (i32, i32, i32) {
    %c0_i32 = arith.constant 0 : i32
    %c0_i32_0 = arith.constant 0 : i32
    return %arg0, %arg1, %c0_i32 : i32, i32, i32
  }
}

</mosaic_0001>

<bundles_post_ra>
// kernel: causal_self_attention_v2.3
= control target key start
LH: loop header
LB: loop body
LE: loop exit
PB: predicated region body
PF: predicated region fallthrough
CT: control target
= control target key end

     0   :  { %10 = vsyncpa [#allocation4], 0  ;;  %s296_s0 = inlined_call_operand.hbm [shape: f32[16,32], index: 0, kind: input, shape index: {}]   ;;  %s297_s1 = inlined_call_operand.hbm [shape: f32[32,96], index: 1, kind: input, shape index: {}]   ;;  %s298_s2 = inlined_call_operand.vmem [shape: f32[1,96], index: 2, kind: input, shape index: {}]   ;;  %s299_s3 = inlined_call_operand.vmem [shape: f32[16,32], index: 3, kind: output, shape index: {0}]   ;;  %s300_s4 = inlined_call_operand.vmem [shape: f32[16,64], index: 4, kind: output, shape index: {1}]  }
   0x1   :  { %11 = vsyncpa [#allocation6], 0  ;;  %s218_s15 = smov [#allocation3]   ;;  %s170_s19 = scalar_lea.hbm %s296_s0, 256 }
   0x2   :  { %s17_s16 = sshll.u32 %s218_s15, 4  ;;  %p171_p0 = scmp.ne.s32.totalorder %s296_s0, %s170_s19  ;;  %s18_s16 = int_to_ptr.vmem [resolvable:$true] %s17_s16 }
   0x3   :  { %p174_p1 = scmp.lt.u32.totalorder %s170_s19, %s296_s0 }
   0x5   :  { %p176_p2 = pnand %p174_p1, %p171_p0 }
   0x7   :  { %179 = shalt.err (!%p176_p2)
}
   0x8   :  { %s180_s24 = scalar_lea.vmem %s18_s16, 256  ;;  %p185_p4 = scmp.lt.s32.totalorder %s18_s16, %s18_s16 }
   0x9   :  { %p181_p3 = scmp.ne.s32.totalorder %s18_s16, %s180_s24  ;;  %p186_p5 = scmp.lt.s32.totalorder %s180_s24, %s180_s24 }
   0xb   :  { %p187_p6 = por %p186_p5, %p185_p4 }
   0xd   :  { %p188_p7 = pnand %p187_p6, %p181_p3 }
   0xf   :  { %191 = shalt.err (!%p188_p7)
}
  0x10   :  { %s219_s25 = smov 128   ;;  %s220_s26 = smov 8  }
  0x11   :  { %23 = dma.hbm_to_vmem [thread:$0]  %s296_s0, 256, %s18_s16, [#allocation4], %s219_s25, %s219_s25, %s220_s26  }
  0x12   :  { %s221_s29 = smov [#allocation5]   ;;  %s192_s7 = scalar_lea.hbm %s297_s1, 512 }
  0x13   :  { %s29_s30 = sshll.u32 %s221_s29, 4  ;;  %p193_p8 = scmp.ne.s32.totalorder %s297_s1, %s192_s7  ;;  %s30_s30 = int_to_ptr.vmem [resolvable:$true] %s29_s30 }
  0x14   :  { %p196_p9 = scmp.lt.u32.totalorder %s192_s7, %s297_s1 }
  0x16   :  { %p198_p10 = pnand %p196_p9, %p193_p8 }
  0x18   :  { %201 = shalt.err (!%p198_p10)
}
  0x19   :  { %s202_s12 = scalar_lea.vmem %s30_s30, 512  ;;  %p207_p12 = scmp.lt.s32.totalorder %s30_s30, %s30_s30 }
  0x1a   :  { %p203_p11 = scmp.ne.s32.totalorder %s30_s30, %s202_s12  ;;  %p208_p13 = scmp.lt.s32.totalorder %s202_s12, %s202_s12 }
  0x1c   :  { %p209_p0 = por %p208_p13, %p207_p12 }
  0x1e   :  { %p210_p1 = pnand %p209_p0, %p203_p11 }
  0x20   :  { %213 = shalt.err (!%p210_p1)
}
  0x21   :  { %35 = dma.hbm_to_vmem [thread:$0]  %s297_s1, 512, %s30_s30, [#allocation6], %s219_s25, %s219_s25, %s220_s26  }
  0x22   :  { %214 = dma.done.wait [#allocation4], 256  }
  0x23   :  { %215 = vsyncadd [#allocation4], 4294967040 }
  0x24   :  { %216 = dma.done.wait [#allocation6], 512  }
  0x25   :  { %217 = vsyncadd [#allocation6], 4294966784  ;;  %vm49_vm0 = vcmask 785408   ;;  %v222_v0 = vmov 0.0   ;;  %vm223_vm1 = vmmov 0   ;;  %v57_v1 = vld [vmem:[#allocation5] sm:$0xff] }
  0x26   :  { %50 = vst.msk [vmem:[#allocation2] sm:$0xff] %vm49_vm0, %v222_v0  ;;  %51 = vst.msk [vmem:[#allocation2 + $0x8] sm:$0xff] %vm49_vm0, %v222_v0  ;;  %155 = vmatprep.subr.bf16.mxu0 %v222_v0  ;;  %159 = vmatprep.mubr.msk.bf16.mxu0 %vm223_vm1, %v222_v0  ;;  %v58_v2 = vld [vmem:[#allocation5 + $0x8] sm:$0xff]  ;;  %v59_v3 = vld [vmem:[#allocation5 + $0x10] sm:$0xff]  ;;  %vm63_vm2 = vcmask 261120   ;;  %s224_s15 = smov 96  }
  0x27   :  { %v61_v4 = vpack.c.bf16 %v58_v2, %v57_v1  ;;  %v60_v5 = vld [vmem:[#allocation5 + $0x18] sm:$0xff]  ;;  %v54_v7 = vld [vmem:[#allocation3] sm:$0xff]  ;;  %v151_v18 = vld [vmem:[%s298_s2] ss:$0 sm:$0xff]  ;;  %vm137_vm3 = vcmask 523264  }
  0x28   :  { %v62_v6 = vpack.c.bf16 %v60_v5, %v59_v3  ;;  %v55_v8 = vld [vmem:[#allocation3 + $0x8] sm:$0xff] }
  0x29   :  { %156 = vmatpush3.bf16.msra.mxu0 %v61_v4  ;;  %v56_v9 = vpack.c.bf16 %v55_v8, %v54_v7 }
  0x2a   :  { %157 = vmatprep.subr.bf16.mxu0 %v222_v0 }
  0x2d   :  { %158 = vmatpush3.bf16.msra.mxu0 %v62_v6  ;;  %v52_v10 = vld [vmem:[#allocation2] sm:$0xff]  ;;  %v53_v12 = vld [vmem:[#allocation2 + $0x8] sm:$0xff] }
  0x30   :  { %160 = vmatmul.mubr.msk.bf16.vlgmr.msra.gmra.mrb[0].mxu0 %vm63_vm2, %v56_v9 }
 0x103   :  { %v101_v11 = vpop.f32.mrb[0].mxu0 }
 0x104   :  { %v108_v13 = vadd.f32 %v101_v11, %v52_v10  ;;  %v161_v14 = vpop.f32.mrb[1].mxu0 }
 0x105   :  { %v104_v15 = vpop.f32.mrb[2].mxu0 }
 0x106   :  { %111 = vst.msk [vmem:[#allocation2] sm:$0xff] %vm49_vm0, %v108_v13  ;;  %v109_v16 = vadd.f32 %v104_v15, %v53_v12  ;;  %v162_v17 = vpop.f32.mrb[3].mxu0 }
 0x108   :  { %112 = vst.msk [vmem:[#allocation2 + $0x8] sm:$0xff] %vm49_vm0, %v109_v16 }
 0x10d   :  { %v116_v19 = vld [vmem:[#allocation2] sm:$0xff] }
 0x10e   :  { %v125_v20 = vadd.f32 %v151_v18, %v116_v19 }
 0x10f   :  { %v117_v21 = vld [vmem:[#allocation2 + $0x8] sm:$0xff] }
 0x110   :  { %v126_v22 = vadd.f32 %v151_v18, %v117_v21  ;;  %131 = vrot.lane.b32.xlu0 %v125_v20, %s224_s15  ;;  %127 = vst.msk [vmem:[%s299_s3] sm:$0xff] %vm63_vm2, %v125_v20 }
 0x112   :  { %128 = vst.msk [vmem:[%s299_s3 + $0x8] sm:$0xff] %vm63_vm2, %v126_v22 }
 0x114   :  { %133 = vrot.lane.b32.xlu0 %v126_v22, %s224_s15 }
 0x182   :  { %v132_v23 = vpop.permute.xlu0 %131 }
 0x183   :  { %138 = vst.msk [vmem:[%s300_s4] sm:$0xff] %vm137_vm3, %v132_v23 }
 0x186   :  { %v134_v24 = vpop.permute.xlu0 %133 }
 0x187   :  { %139 = vst.msk [vmem:[%s300_s4 + $0x8] sm:$0xff] %vm137_vm3, %v134_v24 }
 0x188   :  { %148 = vsyncpa [#allocation4], 1 }
 0x189   :  { %149 = vsyncpa [#allocation6], 1 }

// kernel: causal_self_attention_v2.5
= control target key start
LH: loop header
LB: loop body
LE: loop exit
PB: predicated region body
PF: predicated region fallthrough
CT: control target
= control target key end

     0   :  { %vm20_vm0 = vcmask 261120   ;;  %v157_v3 = vmov 0.0   ;;  %vm158_vm1 = vmmov 0   ;;  %s222_s0 = inlined_call_operand.vmem [shape: f32[16,32], index: 0, kind: input, shape index: {}]   ;;  %s223_s1 = inlined_call_operand.vmem [shape: f32[32,32], index: 1, kind: input, shape index: {}]   ;;  %s224_s2 = inlined_call_operand.vmem [shape: f32[1,32], index: 2, kind: input, shape index: {}]   ;;  %s225_s3 = inlined_call_operand.hbm [shape: f32[16,32], index: 3, kind: output, shape index: {}]  }
   0x1   :  { %v28_v0 = vld [vmem:[%s223_s1] sm:$0xff]  ;;  %v29_v1 = vld [vmem:[%s223_s1 + $0x8] sm:$0xff]  ;;  %v30_v2 = vld [vmem:[%s223_s1 + $0x10] sm:$0xff]  ;;  %120 = vmatprep.subr.bf16.mxu0 %v157_v3  ;;  %124 = vmatprep.mubr.msk.bf16.mxu0 %vm158_vm1, %v157_v3  ;;  %21 = vst.msk [vmem:[#allocation2] sm:$0xff] %vm20_vm0, %v157_v3 }
   0x2   :  { %v32_v4 = vpack.c.bf16 %v29_v1, %v28_v0  ;;  %v31_v5 = vld [vmem:[%s223_s1 + $0x18] sm:$0xff]  ;;  %22 = vst.msk [vmem:[#allocation2 + $0x8] sm:$0xff] %vm20_vm0, %v157_v3 }
   0x3   :  { %8 = vsyncpa [#allocation4], 0  ;;  %v33_v6 = vpack.c.bf16 %v31_v5, %v30_v2  ;;  %v25_v7 = vld [vmem:[%s222_s0] sm:$0xff]  ;;  %v26_v8 = vld [vmem:[%s222_s0 + $0x8] sm:$0xff]  ;;  %s159_s0 = smov [#allocation3]  }
   0x4   :  { %121 = vmatpush3.bf16.msra.mxu0 %v32_v4  ;;  %v27_v9 = vpack.c.bf16 %v26_v8, %v25_v7  ;;  %v116_v18 = vld [vmem:[%s224_s2] ss:$0 sm:$0xff]  ;;  %s104_s25 = sshll.u32 %s159_s0, 4  ;;  %s105_s25 = int_to_ptr.vmem [resolvable:$true] %s104_s25 }
   0x5   :  { %122 = vmatprep.subr.bf16.mxu0 %v157_v3  ;;  %s133_s26 = scalar_lea.vmem %s105_s25, 256  ;;  %p138_p1 = scmp.lt.s32.totalorder %s105_s25, %s105_s25 }
   0x6   :  { %p134_p0 = scmp.ne.s32.totalorder %s105_s25, %s133_s26  ;;  %p139_p2 = scmp.lt.s32.totalorder %s133_s26, %s133_s26 }
   0x8   :  { %123 = vmatpush3.bf16.msra.mxu0 %v33_v6  ;;  %v23_v10 = vld [vmem:[#allocation2] sm:$0xff]  ;;  %p140_p3 = por %p139_p2, %p138_p1 }
   0x9   :  { %v24_v12 = vld [vmem:[#allocation2 + $0x8] sm:$0xff] }
   0xa   :  { %p141_p4 = pnand %p140_p3, %p134_p0 }
   0xb   :  { %125 = vmatmul.mubr.msk.bf16.vlgmr.msra.gmra.mrb[0].mxu0 %vm20_vm0, %v27_v9 }
  0xde   :  { %v72_v11 = vpop.f32.mrb[0].mxu0 }
  0xdf   :  { %v79_v13 = vadd.f32 %v72_v11, %v23_v10  ;;  %v126_v14 = vpop.f32.mrb[1].mxu0 }
  0xe0   :  { %v75_v15 = vpop.f32.mrb[2].mxu0 }
  0xe1   :  { %81 = vst.msk [vmem:[#allocation2] sm:$0xff] %vm20_vm0, %v79_v13  ;;  %v80_v16 = vadd.f32 %v75_v15, %v24_v12  ;;  %v127_v17 = vpop.f32.mrb[3].mxu0 }
  0xe3   :  { %82 = vst.msk [vmem:[#allocation2 + $0x8] sm:$0xff] %vm20_vm0, %v80_v16 }
  0xe8   :  { %v86_v19 = vld [vmem:[#allocation2] sm:$0xff] }
  0xe9   :  { %v95_v20 = vadd.f32 %v116_v18, %v86_v19 }
  0xea   :  { %v87_v21 = vld [vmem:[#allocation2 + $0x8] sm:$0xff] }
  0xeb   :  { %v96_v22 = vadd.f32 %v116_v18, %v87_v21  ;;  %97 = vst.msk [vmem:[#allocation3] sm:$0xff] %vm20_vm0, %v95_v20 }
  0xed   :  { %98 = vst.msk [vmem:[#allocation3 + $0x8] sm:$0xff] %vm20_vm0, %v96_v22 }
  0xee   :  { %144 = shalt.err (!%p141_p4)
}
  0xef   :  { %s145_s28 = scalar_lea.hbm %s225_s3, 256 }
  0xf0   :  { %p146_p5 = scmp.ne.s32.totalorder %s225_s3, %s145_s28  ;;  %p149_p6 = scmp.lt.u32.totalorder %s145_s28, %s225_s3 }
  0xf2   :  { %p151_p7 = pnand %p149_p6, %p146_p5 }
  0xf4   :  { %154 = shalt.err (!%p151_p7)
}
  0xf5   :  { %s160_s6 = smov 128   ;;  %s161_s7 = smov 8  }
  0xf6   :  { %110 = dma.vmem_to_hbm [thread:$0]  %s105_s25, 256, %s225_s3, [#allocation4], %s160_s6, %s160_s6, %s161_s7  }
  0xf7   :  { %155 = dma.done.wait [#allocation4], 256  }
  0xf8   :  { %156 = vsyncadd [#allocation4], 4294967040 }
  0xf9   :  { %114 = vsyncpa [#allocation4], 1 }

// kernel: causal_self_attention_v2.4
= control target key start
LH: loop header
LB: loop body
LE: loop exit
PB: predicated region body
PF: predicated region fallthrough
CT: control target
= control target key end

     0   :  { %s1119_s9 = smov 0   ;;  %s1121_s10 = smov 0   ;;  %s1298_s0 = inlined_call_operand.vmem [shape: f32[2,8,32], index: 0, kind: input, shape index: {}]   ;;  %s1299_s1 = inlined_call_operand.vmem [shape: f32[2,8,64], index: 1, kind: input, shape index: {}]   ;;  %s1300_s2 = inlined_call_operand.vmem [shape: f32[2,8,32], index: 2, kind: output, shape index: {}]  }
   0x1   :  { %s1123_s11 = smov 0  }
   0x2 LB: > { %s31_s12 = sadd.s32 1, %s1081_s10  ;;  %p913_p0 = scmp.ge.s32.totalorder %s1085_s11, 1  ;;  %s1085_s11 = sphi %s1123_s11, %s12_s11   ;;  %s1081_s10 = sphi %s1121_s10, %s1302_s10   ;;  %s1077_s9 = sphi %s1119_s9, %s1301_s9  }
   0x3   : > { %p33_p1 = scmp.ge.s32.totalorder %s31_s12, 2  ;;  %p151_p2 = scmp.lt.s32.totalorder %s1085_s11, 3 }
   0x5   : > { %s1304_s12 = smov (%p33_p1, %s31_s12), 0  ;;  %p152_p3 = pnand %p913_p0, %p151_p2 }
   0x6   : > { %p184_p4 = scmp.lt.s32.totalorder (!%p152_p3), %s1077_s9, 1  ;;  %v1087_v0 = vmov (!%p152_p3), 0.0   ;;  %vm1088_vm0 = vmmov (!%p152_p3), 0   ;;  %vm219_vm1 = vcmask (!%p152_p3), 64512   ;;  %v1089_v7 = vmov (!%p152_p3), -inf   ;;  %s1091_s20 = smov (!%p152_p3), 96  }
   0x7   : > { %155 = sbr.rel (%p152_p3) target bundleno = 1409 (0x581), region = 28  ;;  %943 = vmatprep.subr.bf16.mxu0 (!%p152_p3), %v1087_v0  ;;  %211 = vst [vmem:[#allocation3] sm:$0xff] (!%p152_p3), %v1087_v0  ;;  %945 = vmatprep.mubr.msk.bf16.mxu0 (!%p152_p3), %vm1088_vm0, %v1087_v0  ;;  %210 = vst [vmem:[#allocation2] sm:$0xff] (!%p152_p3), %v1089_v7  ;;  %v1090_v13 = vmov (!%p152_p3), 0   ;;  %s1092_s21 = smov (!%p152_p3), 120   ;;  %vm288_vm2 = vcmask (!%p152_p3), 7168  }
   0x8   : > { %949 = vmatprep.subr.bf16.mxu1 (!%p152_p3), %v1087_v0  ;;  %951 = vmatprep.mubr.msk.bf16.mxu1 (!%p152_p3), %vm1088_vm0, %v1087_v0  ;;  %s1093_s22 = smov (!%p152_p3), 112   ;;  %s1094_s23 = smov (!%p152_p3), 104   ;;  %vm304_vm3 = vcmask (!%p152_p3), 1043456   ;;  %v1095_v48 = vmov (!%p152_p3), 1   ;;  %v1096_v51 = vmov (!%p152_p3), 2   ;;  %vm430_vm4 = vcmask (!%p152_p3), 15368  }
   0x9   : > { %1032 = vset.pattern.permute.xlu0 (!%p152_p3), %v1090_v13  ;;  %1033 = vset.pattern.permute.xlu1 (!%p152_p3), %v1095_v48  ;;  %s1097_s24 = smov (!%p152_p3), 88   ;;  %v1098_v59 = vmov (!%p152_p3), 3   ;;  %vm212_vm5 = vcmask (!%p152_p3), 261120   ;;  %vm575_vm6 = vcmask (!%p152_p3), 23568   ;;  %vm720_vm7 = vcmask (!%p152_p3), 31768   ;;  %s1099_s25 = smov (!%p152_p3), 80  }
   0xa   : > { %213 = vst.msk [vmem:[#allocation4] sm:$0xff] (!%p152_p3), %vm212_vm5, %v1087_v0  ;;  %s1100_s26 = smov (!%p152_p3), 72   ;;  %s1101_s27 = smov (!%p152_p3), 8   ;;  %vm493_vm8 = vcmask (!%p152_p3), 130112   ;;  %vm638_vm9 = vcmask (!%p152_p3), 195712   ;;  %vm783_vm10 = vcmask (!%p152_p3), 261312  }
   0xb   : > { %s1102_s28 = smov (!%p152_p3), 16   ;;  %s1103_s29 = smov (!%p152_p3), 24   ;;  %vm809_vm11 = vcmask (!%p152_p3), 130048   ;;  %vm811_vm12 = vcmask (!%p152_p3), 195584  }
   0xe   : > { %s1306_s9 = smov (!%p184_p4, %s1077_s9), 1 }
   0xf   : > { %s1144_s13 = sshll.u32 %s1306_s9, 3 }
  0x10   : > { %s190_s16 = scalar_lea.vmem %s1298_s0, %s1144_s13  ;;  %s197_s19 = scalar_lea.vmem %s1299_s1, %s1144_s13 }
  0x11   : > { %v217_v1 = vld [vmem:[%s197_s19] sm:$0xff]  ;;  %s204_s4 = scalar_lea.vmem %s1300_s2, %s1144_s13 }
  0x12   : > { %v214_v2 = vld [vmem:[%s190_s16] sm:$0xff]  ;;  %v1154_v3 = vpack.c.bf16 %v217_v1, %v217_v1 }
  0x13   : > { %v215_v5 = vmul.f32 0.35355338, %v214_v2 }
  0x14   : > { %v224_v4 = vsel %vm219_vm1, %v1154_v3, 0  ;;  %299 = vrot.lane.b32.xlu1 %v1154_v3, %s1091_s20 }
  0x15   : > { %944 = vmatpush3.bf16.xpose.msra.mxu0 %v224_v4  ;;  %v216_v6 = vpack.c.bf16 %v215_v5, %v215_v5 }
  0x16   : > { %961 = vmatprep.subr.bf16.mxu0 %v1087_v0 }
  0x18   : > { %360 = vrot.lane.b32.xlu1 %v1154_v3, %s1092_s21 }
  0x1c   : > { %946 = vmatmul.mubr.msk.bf16.vlgmr.msra.gmra.mrb[0].mxu0 %vm219_vm1, %v216_v6  ;;  %357 = vrot.lane.b32.xlu1 %v216_v6, %s1092_s21 }
  0x1d   : > { %963 = vmatprep.mubr.msk.bf16.mxu0 %vm1088_vm0, %v1087_v0 }
  0x20   : > { %505 = vrot.lane.b32.xlu1 %v1154_v3, %s1093_s22 }
  0x24   : > { %502 = vrot.lane.b32.xlu1 %v216_v6, %s1093_s22 }
  0x28   : > { %650 = vrot.lane.b32.xlu1 %v1154_v3, %s1094_s23 }
  0x2c   : > { %647 = vrot.lane.b32.xlu1 %v216_v6, %s1094_s23 }
  0x86   : > { %v300_v15 = vpop.permute.xlu1 %299 }
  0x87   : > { %v306_v16 = vsel %vm304_vm3, %v300_v15, 0 }
  0x88   : > { %950 = vmatpush3.bf16.msra.mxu1 %v306_v16 }
  0x89   : > { %955 = vmatprep.subr.bf16.mxu1 %v1087_v0 }
  0x8a   : > { %v361_v20 = vpop.permute.xlu1 %360 }
  0x8b   : > { %v366_v23 = vsel %vm219_vm1, %v361_v20, 0 }
  0x8e   : > { %v358_v21 = vpop.permute.xlu1 %357 }
  0x92   : > { %v506_v25 = vpop.permute.xlu1 %505 }
  0x93   : > { %v511_v27 = vsel %vm219_vm1, %v506_v25, 0 }
  0x96   : > { %v503_v26 = vpop.permute.xlu1 %502 }
  0x9a   : > { %v651_v28 = vpop.permute.xlu1 %650 }
  0x9b   : > { %v656_v29 = vsel %vm219_vm1, %v651_v28, 0 }
  0x9e   : > { %v648_v30 = vpop.permute.xlu1 %647 }
  0xef   : > { %v260_v8 = vpop.f32.mrb[0].mxu0 }
  0xf0   : > { %v947_v9 = vpop.f32.mrb[1].mxu0  ;;  %v267_v10 = vsel %vm219_vm1, %v260_v8, -inf }
  0xf1   : > { %268 = vmax.xlane.f32.xlu0 %v267_v10  ;;  %v263_v11 = vpop.f32.mrb[2].mxu0 }
  0xf2   : > { %v948_v12 = vpop.f32.mrb[3].mxu0 }
 0x17e   : > { %v1168_v14 = vpop.xlane.xlu0 %268 }
 0x17f   : > { %350 = vst.msk [vmem:[#allocation2] sm:$0xff] %vm288_vm2, %v1168_v14  ;;  %276 = vperm.xlu0 %1032, %v1168_v14   ;;  %v271_v52 = vsub.f32 -inf, %v1168_v14 }
 0x181   : > { %v272_v56 = vmul.f32 1.442695, %v271_v52 }
 0x183   : > { %1034 = vset.pattern.permute.xlu0 %v1096_v51 }
 0x186   : > { %v408_v54 = vld [vmem:[#allocation2] sm:$0xff] }
 0x1fe   : > { %v277_v17 = vpop.permute.xlu0 %276 }
 0x1ff   : > { %v279_v18 = vsub.f32 %v260_v8, %v277_v17  ;;  %v290_v17 = vld [vmem:[#allocation4] sm:$0xff] }
 0x201   : > { %v280_v19 = vmul.f32 1.442695, %v279_v18 }
 0x203   : > { %1045 = vpow2.f32 %v280_v19 }
 0x204   : > { %1047 = vpow2.f32 %v272_v56 }
 0x20d   : > { %v1175_v22 = vpop.eup %1045 }
 0x20e   : > { %v297_v24 = vpack.c.bf16 %v1175_v22, %v1175_v22  ;;  %v1226_v63 = vpop.eup %1047  ;;  %v284_v6 = vsel %vm219_vm1, %v1175_v22, 0.0 }
 0x210   : > { %952 = vmatmul.mubr.msk.bf16.vlgmr.msra.gmra.mrb[0].mxu1 %vm219_vm1, %v297_v24 }
 0x211   : > { %956 = vmatpush3.bf16.xpose.msra.mxu1 %v366_v23  ;;  %957 = vmatprep.mubr.msk.bf16.mxu1 %vm1088_vm0, %v1087_v0 }
 0x212   : > { %967 = vmatprep.subr.bf16.mxu1 %v1087_v0 }
 0x218   : > { %958 = vmatmul.mubr.msk.bf16.vlgmr.msra.gmra.mrb[4].mxu1 %vm219_vm1, %v358_v21 }
 0x219   : > { %968 = vmatpush3.bf16.xpose.msra.mxu1 %v511_v27  ;;  %969 = vmatprep.mubr.msk.bf16.mxu1 %vm1088_vm0, %v1087_v0 }
 0x21a   : > { %979 = vmatprep.subr.bf16.mxu1 %v1087_v0 }
 0x220   : > { %970 = vmatmul.mubr.msk.bf16.vlgmr.msra.gmra.mrb[8].mxu1 %vm219_vm1, %v503_v26 }
 0x221   : > { %980 = vmatpush3.bf16.xpose.msra.mxu1 %v656_v29  ;;  %981 = vmatprep.mubr.msk.bf16.mxu1 %vm1088_vm0, %v1087_v0 }
 0x228   : > { %982 = vmatmul.mubr.msk.bf16.vlgmr.msra.gmra.mrb[12].mxu1 %vm219_vm1, %v648_v30 }
 0x2e3   : > { %v1194_v31 = vpop.f32.mrb[0].mxu1 }
 0x2e4   : > { %v953_v32 = vpop.f32.mrb[1].mxu1 }
 0x2e5   : > { %v345_v33 = vpop.f32.mrb[2].mxu1 }
 0x2e6   : > { %v954_v34 = vpop.f32.mrb[3].mxu1 }
 0x2eb   : > { %v1196_v35 = vpop.f32.mrb[4].mxu1 }
 0x2ec   : > { %v959_v36 = vpop.f32.mrb[5].mxu1  ;;  %v409_v37 = vsel %vm219_vm1, %v1196_v35, -inf }
 0x2ed   : > { %410 = vmax.xlane.f32.xlu1 %v409_v37  ;;  %v405_v38 = vpop.f32.mrb[6].mxu1  ;;  %v283_v36 = vmul.f32 0.0, %v1226_v63 }
 0x2ee   : > { %v960_v39 = vpop.f32.mrb[7].mxu1 }
 0x2f3   : > { %v1200_v40 = vpop.f32.mrb[8].mxu1 }
 0x2f4   : > { %v971_v41 = vpop.f32.mrb[9].mxu1  ;;  %v554_v42 = vsel %vm219_vm1, %v1200_v40, -inf }
 0x2f5   : > { %555 = vmax.xlane.f32.xlu0 %v554_v42  ;;  %v550_v43 = vpop.f32.mrb[10].mxu1 }
 0x2f6   : > { %v972_v44 = vpop.f32.mrb[11].mxu1 }
 0x2fb   : > { %v1204_v45 = vpop.f32.mrb[12].mxu1 }
 0x2fc   : > { %v983_v46 = vpop.f32.mrb[13].mxu1  ;;  %v699_v47 = vsel %vm219_vm1, %v1204_v45, -inf }
 0x2fd   : > { %v695_v49 = vpop.f32.mrb[14].mxu1  ;;  %700 = vmax.xlane.f32.xlu1 %v699_v47 }
 0x2fe   : > { %v984_v50 = vpop.f32.mrb[15].mxu1 }
 0x37a   : > { %v411_v53 = vpop.xlane.xlu1 %410 }
 0x37b   : > { %v412_v55 = vmax.f32 %v408_v54, %v411_v53 }
 0x37d   : > { %v413_v57 = vsub.f32 %v408_v54, %v412_v55  ;;  %495 = vst.msk [vmem:[#allocation2] sm:$0xff] %vm430_vm4, %v412_v55  ;;  %418 = vperm.xlu1 %1033, %v412_v55  }
 0x37f   : > { %v414_v7 = vmul.f32 1.442695, %v413_v57 }
 0x381   : > { %440 = vrot.lane.b32.xlu1 %v1154_v3, %s1097_s24  ;;  %1049 = vpow2.f32 %v414_v7 }
 0x382   : > { %v556_v58 = vpop.xlane.xlu0 %555  ;;  %1035 = vset.pattern.permute.xlu1 %v1098_v59 }
 0x384   : > { %v1214_v60 = vld [vmem:[#allocation2] sm:$0xff] }
 0x385   : > { %v1219_v61 = vmax.f32 %v1214_v60, %v556_v58 }
 0x387   : > { %v558_v62 = vsub.f32 %v1214_v60, %v1219_v61  ;;  %640 = vst.msk [vmem:[#allocation2] sm:$0xff] %vm575_vm6, %v1219_v61  ;;  %563 = vperm.xlu0 %1034, %v1219_v61  }
 0x389   : > { %v559_v39 = vmul.f32 1.442695, %v558_v62 }
 0x38a   : > { %v701_v1 = vpop.xlane.xlu1 %700 }
 0x38b   : > { %1036 = vset.pattern.permute.xlu0 %v1090_v13  ;;  %v1050_v8 = vpop.eup %1049 }
 0x38c   : > { %293 = vperm.xlu0 %1036, %v1226_v63  }
 0x38e   : > { %v1230_v2 = vld [vmem:[#allocation2] sm:$0xff] }
 0x38f   : > { %v1233_v4 = vmax.f32 %v1230_v2, %v701_v1 }
 0x390   : > { %1038 = vset.pattern.permute.xlu0 %v1096_v51 }
 0x391   : > { %v703_v5 = vsub.f32 %v1230_v2, %v1233_v4  ;;  %785 = vst.msk [vmem:[#allocation2] sm:$0xff] %vm720_vm7, %v1233_v4  ;;  %708 = vperm.xlu1 %1035, %v1233_v4  }
 0x393   : > { %v704_v43 = vmul.f32 1.442695, %v703_v5 }
 0x395   : > { %585 = vrot.lane.b32.xlu1 %v1154_v3, %s1099_s25 }
 0x396   : > { %1037 = vset.pattern.permute.xlu1 %v1095_v48 }
 0x399   : > { %730 = vrot.lane.b32.xlu1 %v1154_v3, %s1100_s26 }
 0x3bd   : > { %285 = vadd.xlane.f32.xlu1 %v284_v6 }
 0x3ce   : > { %435 = vperm.xlu1 %1037, %v1050_v8  }
 0x3d2   : > { %1040 = vset.pattern.permute.xlu1 %v1090_v13 }
 0x3fc   : > { %v419_v9 = vpop.permute.xlu1 %418 }
 0x3fd   : > { %v421_v10 = vsub.f32 %v1196_v35, %v419_v9 }
 0x3ff   : > { %v422_v11 = vmul.f32 1.442695, %v421_v10 }
 0x400   : > { %v441_v12 = vpop.permute.xlu1 %440 }
 0x401   : > { %1051 = vpow2.f32 %v422_v11  ;;  %v446_v14 = vsel %vm304_vm3, %v441_v12, 0 }
 0x402   : > { %962 = vmatpush3.bf16.msra.mxu0 %v446_v14 }
 0x403   : > { %973 = vmatprep.subr.bf16.mxu0 %v1087_v0 }
 0x406   : > { %v564_v3 = vpop.permute.xlu0 %563 }
 0x407   : > { %v566_v15 = vsub.f32 %v1200_v40, %v564_v3 }
 0x409   : > { %v567_v16 = vmul.f32 1.442695, %v566_v15 }
 0x40b   : > { %v1052_v18 = vpop.eup %1051  ;;  %1053 = vpow2.f32 %v567_v16  ;;  %v294_v19 = vpop.permute.xlu0 %293 }
 0x40c   : > { %v296_v13 = vmul.f32 %v294_v19, %v290_v17  ;;  %v426_v20 = vsel %vm219_vm1, %v1052_v18, 0.0  ;;  %v439_v21 = vpack.c.bf16 %v1052_v18, %v1052_v18 }
 0x40d   : > { %427 = vadd.xlane.f32.xlu0 %v426_v20 }
 0x40e   : > { %v348_v22 = vadd.f32 %v1194_v31, %v296_v13  ;;  %964 = vmatmul.mubr.msk.bf16.vlgmr.msra.gmra.mrb[4].mxu0 %vm219_vm1, %v439_v21 }
 0x40f   : > { %975 = vmatprep.mubr.msk.bf16.mxu0 %vm1088_vm0, %v1087_v0 }
 0x410   : > { %349 = vst.msk [vmem:[#allocation4] sm:$0xff] %vm219_vm1, %v348_v22  ;;  %v709_v23 = vpop.permute.xlu1 %708 }
 0x411   : > { %v711_v24 = vsub.f32 %v1204_v45, %v709_v23 }
 0x413   : > { %v712_v25 = vmul.f32 1.442695, %v711_v24 }
 0x414   : > { %v586_v26 = vpop.permute.xlu1 %585 }
 0x415   : > { %v1054_v27 = vpop.eup %1053  ;;  %1055 = vpow2.f32 %v712_v25  ;;  %v591_v28 = vsel %vm304_vm3, %v586_v26, 0 }
 0x416   : > { %974 = vmatpush3.bf16.msra.mxu0 %v591_v28  ;;  %v571_v29 = vsel %vm219_vm1, %v1054_v27, 0.0  ;;  %v584_v30 = vpack.c.bf16 %v1054_v27, %v1054_v27  ;;  %1057 = vpow2.f32 %v559_v39 }
 0x417   : > { %572 = vadd.xlane.f32.xlu1 %v571_v29  ;;  %985 = vmatprep.subr.bf16.mxu0 %v1087_v0  ;;  %1059 = vpow2.f32 %v704_v43  ;;  %v432_v10 = vld [vmem:[#allocation4] sm:$0xff] }
 0x418   : > { %v731_v31 = vpop.permute.xlu1 %730 }
 0x419   : > { %976 = vmatmul.mubr.msk.bf16.vlgmr.msra.gmra.mrb[8].mxu0 %vm219_vm1, %v584_v30  ;;  %v736_v32 = vsel %vm304_vm3, %v731_v31, 0 }
 0x41a   : > { %986 = vmatpush3.bf16.msra.mxu0 %v736_v32  ;;  %987 = vmatprep.mubr.msk.bf16.mxu0 %vm1088_vm0, %v1087_v0 }
 0x41f   : > { %v1056_v33 = vpop.eup %1055 }
 0x420   : > { %v716_v34 = vsel %vm219_vm1, %v1056_v33, 0.0  ;;  %v729_v35 = vpack.c.bf16 %v1056_v33, %v1056_v33  ;;  %v1058_v45 = vpop.eup %1057 }
 0x421   : > { %717 = vadd.xlane.f32.xlu0 %v716_v34  ;;  %v1060_v52 = vpop.eup %1059 }
 0x422   : > { %988 = vmatmul.mubr.msk.bf16.vlgmr.msra.gmra.mrb[12].mxu0 %vm219_vm1, %v729_v35 }
 0x44a   : > { %v286_v37 = vpop.xlane.xlu1 %285 }
 0x44b   : > { %v287_v38 = vadd.f32 %v286_v37, %v283_v36 }
 0x44d   : > { %289 = vst.msk [vmem:[#allocation3] sm:$0xff] %vm288_vm2, %v287_v38 }
 0x44e   : > { %v436_v44 = vpop.permute.xlu1 %435 }
 0x44f   : > { %v438_v11 = vmul.f32 %v436_v44, %v432_v10 }
 0x454   : > { %v424_v40 = vld [vmem:[#allocation3] sm:$0xff] }
 0x455   : > { %v425_v41 = vmul.f32 %v1050_v8, %v424_v40 }
 0x49a   : > { %v428_v0 = vpop.xlane.xlu0 %427 }
 0x49b   : > { %v429_v42 = vadd.f32 %v428_v0, %v425_v41 }
 0x49d   : > { %431 = vst.msk [vmem:[#allocation3] sm:$0xff] %vm430_vm4, %v429_v42 }
 0x4a4   : > { %v569_v46 = vld [vmem:[#allocation3] sm:$0xff]  ;;  %v573_v49 = vpop.xlane.xlu1 %572 }
 0x4a5   : > { %v570_v47 = vmul.f32 %v1058_v45, %v569_v46 }
 0x4a7   : > { %v574_v50 = vadd.f32 %v573_v49, %v570_v47 }
 0x4a9   : > { %576 = vst.msk [vmem:[#allocation3] sm:$0xff] %vm575_vm6, %v574_v50 }
 0x4ae   : > { %v718_v55 = vpop.xlane.xlu0 %717 }
 0x4b0   : > { %v714_v53 = vld [vmem:[#allocation3] sm:$0xff] }
 0x4b1   : > { %v715_v54 = vmul.f32 %v1060_v52, %v714_v53 }
 0x4b3   : > { %v719_v56 = vadd.f32 %v718_v55, %v715_v54 }
 0x4b5   : > { %721 = vst.msk [vmem:[#allocation3] sm:$0xff] %vm720_vm7, %v719_v56 }
 0x4bc   : > { %v789_v60 = vld [vmem:[#allocation3] sm:$0xff] }
 0x4bd   : > { %1061 = vrcp.f32 %v789_v60 }
 0x4c7   : > { %v1062_v5 = vpop.eup %1061 }
 0x4e1   : > { %v482_v57 = vpop.f32.mrb[4].mxu0 }
 0x4e2   : > { %489 = vrot.lane.b32.xlu0 %v482_v57, %s1101_s27  ;;  %v965_v58 = vpop.f32.mrb[5].mxu0 }
 0x4e3   : > { %v485_v61 = vpop.f32.mrb[6].mxu0 }
 0x4e4   : > { %v966_v62 = vpop.f32.mrb[7].mxu0 }
 0x4e6   : > { %580 = vperm.xlu0 %1038, %v1058_v45  }
 0x4ea   : > { %1039 = vset.pattern.permute.xlu0 %v1098_v59 }
 0x4eb   : > { %725 = vperm.xlu0 %1039, %v1060_v52  }
 0x4ec   : > { %v627_v63 = vpop.f32.mrb[8].mxu0 }
 0x4ed   : > { %634 = vrot.lane.b32.xlu1 %v627_v63, %s1102_s28  ;;  %v977_v1 = vpop.f32.mrb[9].mxu0 }
 0x4ee   : > { %v630_v2 = vpop.f32.mrb[10].mxu0 }
 0x4ef   : > { %v978_v4 = vpop.f32.mrb[11].mxu0  ;;  %1041 = vset.pattern.permute.xlu0 %v1095_v48 }
 0x4f1   : > { %793 = vperm.xlu1 %1040, %v1062_v5  }
 0x4f5   : > { %1042 = vset.pattern.permute.xlu1 %v1096_v51  ;;  %v772_v6 = vpop.f32.mrb[12].mxu0 }
 0x4f6   : > { %801 = vperm.xlu1 %1042, %v1062_v5   ;;  %779 = vrot.lane.b32.xlu0 %v772_v6, %s1103_s29  ;;  %v989_v7 = vpop.f32.mrb[13].mxu0 }
 0x4f7   : > { %v775_v8 = vpop.f32.mrb[14].mxu0 }
 0x4f8   : > { %v990_v9 = vpop.f32.mrb[15].mxu0 }
 0x4fa   : > { %1043 = vset.pattern.permute.xlu1 %v1098_v59  ;;  %797 = vperm.xlu0 %1041, %v1062_v5  }
 0x4fb   : > { %805 = vperm.xlu1 %1043, %v1062_v5  }
 0x4fe   : > { %1044 = vset.pattern.permute.xlu0 %v1098_v59 }
 0x554   : > { %v490_v48 = vpop.permute.xlu0 %489 }
 0x555   : > { %v492_v12 = vadd.f32 %v490_v48, %v438_v11 }
 0x557   : > { %494 = vst.msk [vmem:[#allocation4] sm:$0xff] %vm493_vm8, %v492_v12 }
 0x55e   : > { %v577_v51 = vld [vmem:[#allocation4] sm:$0xff] }
 0x55f   : > { %v635_v15 = vpop.permute.xlu1 %634 }
 0x565   : > { %v581_v14 = vpop.permute.xlu0 %580 }
 0x566   : > { %v583_v3 = vmul.f32 %v581_v14, %v577_v51 }
 0x568   : > { %v637_v16 = vadd.f32 %v635_v15, %v583_v3 }
 0x56a   : > { %639 = vst.msk [vmem:[#allocation4] sm:$0xff] %vm638_vm9, %v637_v16  ;;  %v726_v17 = vpop.permute.xlu0 %725 }
 0x56e   : > { %v780_v59 = vpop.permute.xlu0 %779 }
 0x570   : > { %v794_v18 = vpop.permute.xlu1 %793 }
 0x571   : > { %v722_v19 = vld [vmem:[#allocation4] sm:$0xff] }
 0x572   : > { %v728_v13 = vmul.f32 %v726_v17, %v722_v19 }
 0x574   : > { %v782_v20 = vadd.f32 %v780_v59, %v728_v13 }
 0x575   : > { %v802_v21 = vpop.permute.xlu1 %801 }
 0x576   : > { %784 = vst.msk [vmem:[#allocation4] sm:$0xff] %vm783_vm10, %v782_v20 }
 0x579   : > { %v798_v22 = vpop.permute.xlu0 %797 }
 0x57a   : > { %v808_v23 = vsel %vm219_vm1, %v794_v18, %v798_v22  ;;  %v806_v24 = vpop.permute.xlu1 %805 }
 0x57b   : > { %v810_v25 = vsel %vm809_vm11, %v808_v23, %v802_v21 }
 0x57c   : > { %v812_v26 = vsel %vm811_vm12, %v810_v25, %v806_v24 }
 0x57d   : > { %v813_v27 = vld [vmem:[#allocation4] sm:$0xff] }
 0x57e   : > { %v814_v28 = vmul.f32 %v813_v27, %v812_v26 }
 0x580   : > { %816 = vst.msk [vmem:[%s204_s4] sm:$0xff] %vm212_vm5, %v814_v28 }
 0x581 PF: > { %s12_s11 = sadd.s32 1, %s1085_s11   ;;  %s1301_s9 = smov %s1081_s10 }
 0x582   : > { %p9_p5 = scmp.ge.s32.totalorder %s12_s11, 4   ;;  %s1302_s10 = smov %s1304_s12 }
 0x584   :  { %11 = sbr.rel (!%p9_p5) target bundleno = 2 (0x2), region = 69 }

</bundles_post_ra>
